<compile_context>
chip_gen: v6e
topology: v6e:2x2x1
jax: 0.10.0
libtpu: 0.0.40
codegen_flags: <defaults>
</compile_context>

<pallas_src>
import functools

import jax
import jax.numpy as jnp
from jax import lax
from jax.experimental import pallas as pl
from jax.experimental.pallas import tpu as pltpu

_LANE = 128      # vreg lane width
_SUBLANE = 8     # vreg sublane count


# ---------------------------------------------------------------------------
# Small helpers.
# ---------------------------------------------------------------------------
def _round_up(x, m):
    return ((x + m - 1) // m) * m


def _pad_to(a, shape):
    pads = tuple((0, t - s) for s, t in zip(a.shape, shape))
    if any(p[1] for p in pads):
        a = jnp.pad(a, pads)
    return a


def _vmem_capacity_bytes():
    """Physical VMEM of the current TPU generation (fallback: v7x 64 MiB)."""
    try:
        info = pltpu.get_tpu_info()
        return int(getattr(info, "vmem_capacity_bytes", 64 * 1024 * 1024))
    except Exception:
        return 64 * 1024 * 1024


def _choose_batch_tile(B, cap_rows, min_grid_steps=2):
    """Pick (Bt, B_pad).

    Bt is a multiple of 8 (sublane rule) unless it covers the whole batch in one
    block; B_pad is B zero-padded up to a multiple of Bt.  When the batch is big
    enough (>8 rows) we force at least `min_grid_steps` grid steps so the
    "parallel" batch axis can be sharded across v7x's two TensorCores.
    """
    if B <= _SUBLANE:
        # Tiny batch: a single full-extent block is the only legal & cheapest
        # choice (splitting would need sublane padding that costs more than it
        # saves — v7x's second core idles here, unavoidable at this size).
        return B, B
    tile = max(_SUBLANE, min(cap_rows, pl.cdiv(B, max(min_grid_steps, 1))))
    tile = max(_SUBLANE, (tile // _SUBLANE) * _SUBLANE)
    b_pad = pl.cdiv(B, tile) * tile
    return tile, b_pad


# ---------------------------------------------------------------------------
# Attention block (traced inline inside the fused kernel).
#   h     = tanh(ctx @ Wc + bc)[:, None, :] * a        (a = tanh(att @ Wa + ba),
#                                                        precomputed/merged)
#   alpha = softmax(sum_h(h * w_alpha) + b_alpha, axis=regions)
#   out   = tanh((alpha @ att) @ Wp + bp)
# ---------------------------------------------------------------------------
def _attention(a, feat3_mm, ctx, wc, bc, wal, bal, wp, bp, region_mask):
    mm_dtype = wc.dtype

    # fc_ctx: Linear + Tanh.  Dropout(0.5) -> identity (inference).
    c = jnp.tanh(
        jnp.dot(ctx.astype(mm_dtype), wc, preferred_element_type=jnp.float32) + bc
    )                                                        # (Bt, H)

    h = c[:, None, :] * a                                    # (Bt, R, H) f32

    # alpha_net: N=1 Linear done as VPU multiply + lane reduction (wal is (1,H) f32).
    logits = jnp.sum(h * wal[None], axis=-1) + bal           # (Bt, R)
    if region_mask is not None:
        logits = jnp.where(region_mask, logits, -1e30)       # mask padded regions

    # softmax over regions (F.softmax default dim for 2-D input is dim=1).
    logits = logits - jnp.max(logits, axis=-1, keepdims=True)
    e = jnp.exp(logits)
    alpha = e * pl.reciprocal(jnp.sum(e, axis=-1, keepdims=True), approx=True)

    # bmm(alpha.unsqueeze(1), att).squeeze(1): batched (1,R)x(R,E) MXU contraction.
    pooled = lax.dot_general(
        alpha.astype(mm_dtype)[:, None, :], feat3_mm,
        dimension_numbers=(((2,), (1,)), ((0,), (0,))),
        preferred_element_type=jnp.float32,
    )[:, 0, :]                                               # (Bt, E)

    # proj: Linear + Tanh.
    return jnp.tanh(
        jnp.dot(pooled.astype(mm_dtype), wp, preferred_element_type=jnp.float32) + bp
    )                                                        # (Bt, E)


# ---------------------------------------------------------------------------
# Fused kernel: one grid step == one batch tile of Bt images.
# ---------------------------------------------------------------------------
def encoder_image_kernel(x_ref, fc_w_ref, fc_b_ref,
                         watt_ref, batt_ref,
                         a1_wc_ref, a1_bc_ref, a1_wal_ref, a1_bal_ref,
                         a1_wp_ref, a1_bp_ref,
                         a2_wc_ref, a2_bc_ref, a2_wal_ref, a2_bal_ref,
                         a2_wp_ref, a2_bp_ref,
                         out_ref, *, r_pad, r_real, normalize, use_abs):
    BtR, _ = x_ref.shape
    Bt = BtR // r_pad
    E = fc_w_ref.shape[1]          # padded embed size (multiple of 128)
    H = a1_wc_ref.shape[1]         # padded att_hid size (multiple of 128)
    mm_dtype = fc_w_ref.dtype

    # fc (Linear + Tanh): one tall 2-D matmul over all rows of the batch tile.
    # x arrives already in bf16 (cast done once in the wrapper).
    x = x_ref[...]                                           # (Bt*R, F) bf16
    feat_f32 = jnp.tanh(
        jnp.dot(x, fc_w_ref[...], preferred_element_type=jnp.float32)
        + fc_b_ref[...]
    )                                                        # (Bt*R, E) f32
    if r_pad != r_real:
        # Zero the zero-padded region rows (tanh(bias) != 0 there otherwise).
        row_mask = (lax.broadcasted_iota(jnp.int32, (BtR, 1), 0) % r_pad) < r_real
        feat_f32 = jnp.where(row_mask, feat_f32, 0.0)

    # Region mean in f32; the f32 copy dies immediately after the bf16 cast —
    # only the bf16 feat is live across the two attention blocks.
    v0 = jnp.sum(feat_f32.reshape(Bt, r_pad, E), axis=1) * (1.0 / r_real)  # (Bt, E)
    feat_mm = feat_f32.astype(mm_dtype)                      # (Bt*R, E) bf16
    feat3_mm = feat_mm.reshape(Bt, r_pad, E)

    # Merged ctx-independent fc_att for BOTH attention blocks: one tall matmul,
    # hoisted out of the serial v0 -> v1 -> v2 dependency chain.
    a_all = jnp.tanh(
        jnp.dot(feat_mm, watt_ref[...], preferred_element_type=jnp.float32)
        + batt_ref[...]
    )                                                        # (Bt*R, 2H) f32
    a1 = a_all[:, :H].reshape(Bt, r_pad, H)
    a2 = a_all[:, H:].reshape(Bt, r_pad, H)

    region_mask = None
    if r_pad != r_real:
        region_mask = lax.broadcasted_iota(jnp.int32, (Bt, r_pad), 1) < r_real

    v1 = _attention(a1, feat3_mm, v0,
                    a1_wc_ref[...], a1_bc_ref[...], a1_wal_ref[...], a1_bal_ref[...],
                    a1_wp_ref[...], a1_bp_ref[...], region_mask)
    v2 = _attention(a2, feat3_mm, v1,
                    a2_wc_ref[...], a2_bc_ref[...], a2_wal_ref[...], a2_bal_ref[...],
                    a2_wp_ref[...], a2_bp_ref[...], region_mask)

    if normalize:
        # l2norm of the concatenated row without materializing a concat; padded
        # columns are exactly zero so they do not change the norm.  rsqrt runs on
        # the EUP; the tiny epsilon guards degenerate all-zero rows.
        inv = lax.rsqrt(
            jnp.sum(v0 * v0 + v1 * v1 + v2 * v2, axis=1, keepdims=True) + 1e-12)
        v0, v1, v2 = v0 * inv, v1 * inv, v2 * inv
    if use_abs:
        v0, v1, v2 = jnp.abs(v0), jnp.abs(v1), jnp.abs(v2)

    # E is a multiple of 128, so all three stores are full-width, lane-aligned,
    # unmasked vector stores.
    out_ref[:, 0:E] = v0.astype(out_ref.dtype)
    out_ref[:, E:2 * E] = v1.astype(out_ref.dtype)
    out_ref[:, 2 * E:3 * E] = v2.astype(out_ref.dtype)


# ---------------------------------------------------------------------------
# Parameter init (deterministic, torch-Linear-style uniform bounds).
# MXU weight matrices stored as (in, out) in bf16; biases and the (transposed)
# alpha_net weight stay f32 (VPU path).
# ---------------------------------------------------------------------------
def init_params(key, fc_feat_size, embed_size, att_hid_size, dtype=jnp.bfloat16):
    ks = jax.random.split(key, 18)

    def linear(kw, kb, fan_in, fan_out, w_dtype, w_shape=None):
        bound = fan_in ** -0.5
        shape = (fan_in, fan_out) if w_shape is None else w_shape
        w = jax.random.uniform(kw, shape, jnp.float32, -bound, bound).astype(w_dtype)
        b = jax.random.uniform(kb, (1, fan_out), jnp.float32, -bound, bound)
        return w, b

    def att_params(k):
        w_ctx, b_ctx = linear(k[0], k[1], embed_size, att_hid_size, dtype)
        w_att, b_att = linear(k[2], k[3], embed_size, att_hid_size, dtype)
        # alpha_net (out_features=1): weight kept transposed as (1, H), f32.
        w_alpha, b_alpha = linear(k[4], k[5], att_hid_size, 1, jnp.float32,
                                  w_shape=(1, att_hid_size))
        w_proj, b_proj = linear(k[6], k[7], embed_size, embed_size, dtype)
        return dict(w_ctx=w_ctx, b_ctx=b_ctx, w_att=w_att, b_att=b_att,
                    w_alpha=w_alpha, b_alpha=b_alpha,
                    w_proj=w_proj, b_proj=b_proj)

    fc_w, fc_b = linear(ks[0], ks[1], fc_feat_size, embed_size, dtype)
    return dict(fc_w=fc_w, fc_b=fc_b,
                att1=att_params(ks[2:10]), att2=att_params(ks[10:18]))


# ---------------------------------------------------------------------------
# Forward pass wrapper.
# ---------------------------------------------------------------------------
def encoder_image_forward(images, params, *, no_imgnorm=False, use_abs=False):
    B, D1, D2, F = images.shape
    R = D1 * D2
    E = params["fc_w"].shape[1]
    H = params["att1"]["w_ctx"].shape[1]

    mm_dtype = params["fc_w"].dtype
    itemsize = jnp.dtype(mm_dtype).itemsize

    # Lane / sublane aligned internal dims.
    E_pad = _round_up(E, _LANE)
    H_pad = _round_up(H, _LANE)
    R_pad = _round_up(R, _SUBLANE)

    # Generation-aware VMEM plumbing (v7x: 64 MiB -> 24 MiB tile budget, 48 MiB
    # scoped limit; v5e/v6e: 128 MiB -> 48 MiB budget, 96 MiB limit).
    vmem_cap = _vmem_capacity_bytes()
    tile_budget = (vmem_cap * 3) // 8
    vmem_limit = max(32 * 1024 * 1024, min((vmem_cap * 3) // 4, 96 * 1024 * 1024))

    # Zero-pad weights to aligned shapes (padded output columns stay exactly 0).
    fc_w = _pad_to(params["fc_w"], (F, E_pad))
    fc_b = _pad_to(params["fc_b"], (1, E_pad))

    def pad_att(p):
        return dict(
            w_ctx=_pad_to(p["w_ctx"], (E_pad, H_pad)),
            b_ctx=_pad_to(p["b_ctx"], (1, H_pad)),
            w_att=_pad_to(p["w_att"], (E_pad, H_pad)),
            b_att=_pad_to(p["b_att"], (1, H_pad)),
            w_alpha=_pad_to(p["w_alpha"], (1, H_pad)),
            b_alpha=p["b_alpha"],
            w_proj=_pad_to(p["w_proj"], (E_pad, E_pad)),
            b_proj=_pad_to(p["b_proj"], (1, E_pad)))

    a1 = pad_att(params["att1"])
    a2 = pad_att(params["att2"])

    # Merge the two ctx-independent fc_att weights into one (E, 2H) matmul.
    w_att_cat = jnp.concatenate([a1["w_att"], a2["w_att"]], axis=1)   # (E_pad, 2H_pad)
    b_att_cat = jnp.concatenate([a1["b_att"], a2["b_att"]], axis=1)   # (1, 2H_pad)

    # Per-batch-row VMEM footprint (bf16 x double-buffered, f32+bf16 feat copy,
    # merged fc_att activations, one h temporary, double-buffered output rows).
    per_row = (2 * R_pad * F * itemsize
               + R_pad * E_pad * (4 + itemsize)
               + R_pad * 2 * H_pad * 4
               + R_pad * H_pad * 4
               + 2 * 3 * E_pad * 4)
    # Grid-invariant weights: default pipelining double-buffers them, so count x2.
    weight_bytes = 2 * (
        F * E_pad * itemsize + E_pad * 4
        + E_pad * 2 * H_pad * itemsize + 2 * H_pad * 4
        + 2 * (E_pad * H_pad * itemsize + H_pad * 4        # w_ctx, b_ctx
               + H_pad * 4 + 4                             # w_alpha, b_alpha
               + E_pad * E_pad * itemsize + E_pad * 4))    # w_proj, b_proj
    cap_rows = max(1, (tile_budget - weight_bytes) // max(per_row, 1))
    Bt, B_pad = _choose_batch_tile(B, cap_rows, min_grid_steps=2)

    # Build the bf16 input slab in the wrapper (free XLA reshape/pad/cast): the
    # kernel consumes a clean, sublane-aligned 2-D (B_pad*R_pad, F) bf16 slab.
    x = images.reshape(B, R, F)
    if R_pad != R:
        x = jnp.pad(x, ((0, 0), (0, R_pad - R), (0, 0)))
    if B_pad != B:
        x = jnp.pad(x, ((0, B_pad - B), (0, 0), (0, 0)))
    x2 = x.reshape(B_pad * R_pad, F).astype(mm_dtype)

    def const(shape):
        return pl.BlockSpec(shape, lambda i: (0, 0))

    def att_specs():
        return [const((E_pad, H_pad)), const((1, H_pad)),   # w_ctx, b_ctx
                const((1, H_pad)), const((1, 1)),           # w_alpha, b_alpha
                const((E_pad, E_pad)), const((1, E_pad))]   # w_proj, b_proj

    in_specs = ([pl.BlockSpec((Bt * R_pad, F), lambda i: (i, 0)),
                 const((F, E_pad)), const((1, E_pad)),
                 const((E_pad, 2 * H_pad)), const((1, 2 * H_pad))]
                + att_specs() + att_specs())
    out_specs = pl.BlockSpec((Bt, 3 * E_pad), lambda i: (i, 0))

    kernel = functools.partial(encoder_image_kernel,
                               r_pad=R_pad, r_real=R,
                               normalize=not no_imgnorm, use_abs=use_abs)

    out = pl.pallas_call(
        kernel,
        out_shape=jax.ShapeDtypeStruct((B_pad, 3 * E_pad), jnp.float32),
        grid_spec=pltpu.PrefetchScalarGridSpec(
            num_scalar_prefetch=0,
            grid=(B_pad // Bt,),
            in_specs=in_specs,
            out_specs=out_specs,
        ),
        compiler_params=pltpu.CompilerParams(
            dimension_semantics=("parallel",),      # batch tiles are independent
            vmem_limit_bytes=int(vmem_limit),
        ),
    )(x2, fc_w, fc_b, w_att_cat, b_att_cat,
      a1["w_ctx"], a1["b_ctx"], a1["w_alpha"], a1["b_alpha"], a1["w_proj"], a1["b_proj"],
      a2["w_ctx"], a2["b_ctx"], a2["w_alpha"], a2["b_alpha"], a2["w_proj"], a2["b_proj"])

    # Strip batch/embed padding; segment order matches torch.cat([v0, v1, v2], 1).
    return out[:B].reshape(B, 3, E_pad)[:, :, :E].reshape(B, 3 * E)


# ---------------------------------------------------------------------------
# Pure-JAX f32 reference (mirrors the PyTorch module, eval mode) for tolerance
# validation of the bf16/approx-reciprocal kernel.
# ---------------------------------------------------------------------------
def reference_forward(images, params, *, no_imgnorm=False, use_abs=False):
    p = jax.tree_util.tree_map(lambda a: a.astype(jnp.float32), params)
    B, D1, D2, F = images.shape
    feat = jnp.tanh(images.reshape(B, -1, F) @ p["fc_w"] + p["fc_b"])   # (B,R,E)
    v0 = feat.mean(axis=1)

    def att(ap, ctx):
        c = jnp.tanh(ctx @ ap["w_ctx"] + ap["b_ctx"])                   # (B,H)
        a = jnp.tanh(feat @ ap["w_att"] + ap["b_att"])                  # (B,R,H)
        h = c[:, None, :] * a
        logits = jnp.sum(h * ap["w_alpha"][0], axis=-1) + ap["b_alpha"][0, 0]
        alpha = jax.nn.softmax(logits, axis=1)
        pooled = jnp.einsum("br,bre->be", alpha, feat)
        return jnp.tanh(pooled @ ap["w_proj"] + ap["b_proj"])

    v1 = att(p["att1"], v0)
    v2 = att(p["att2"], v1)
    out = jnp.concatenate([v0, v1, v2], axis=1)
    if not no_imgnorm:
        out = out / jnp.linalg.norm(out, axis=1, keepdims=True)
    if use_abs:
        out = jnp.abs(out)
    return out


if __name__ == "__main__":
    key = jax.random.PRNGKey(0)
    k_img, k_param = jax.random.split(key)

    # Small shapes consistent with the module's forward:
    # images: (B, D1, D2, fc_feat_size); embed_size = att_hid_size = 32.
    B, D1, D2 = 2, 4, 4
    FC_FEAT, EMBED, ATT_HID = 32, 32, 32

    images = jax.random.normal(k_img, (B, D1, D2, FC_FEAT), jnp.float32)
    params = init_params(k_param, FC_FEAT, EMBED, ATT_HID, dtype=jnp.bfloat16)

    out = encoder_image_forward(images, params, no_imgnorm=False, use_abs=False)
    out = jax.block_until_ready(out)
    assert out.shape == (B, 3 * EMBED), out.shape
    assert bool(jnp.all(jnp.isfinite(out)))

    # Tolerance validation of bf16-weight / approx-reciprocal tradeoffs vs f32 ref.
    ref = reference_forward(images, params, no_imgnorm=False, use_abs=False)
    max_err = float(jnp.max(jnp.abs(out - ref)))
    assert bool(jnp.allclose(out, ref, atol=5e-2, rtol=0.0)), max_err

    print("KERNEL_OK")
</pallas_src>

<mosaic_0001>
module attributes {stable_mosaic.version = 11 : i64} {
  func.func @encoder_image_kernel(%arg0: i32, %arg1: memref<32x32xbf16, #tpu.memory_space<vmem>>, %arg2: memref<32x128xbf16, #tpu.memory_space<vmem>>, %arg3: memref<1x128xf32, #tpu.memory_space<vmem>>, %arg4: memref<128x256xbf16, #tpu.memory_space<vmem>>, %arg5: memref<1x256xf32, #tpu.memory_space<vmem>>, %arg6: memref<128x128xbf16, #tpu.memory_space<vmem>>, %arg7: memref<1x128xf32, #tpu.memory_space<vmem>>, %arg8: memref<1x128xf32, #tpu.memory_space<vmem>>, %arg9: memref<1x1xf32, #tpu.memory_space<vmem>>, %arg10: memref<128x128xbf16, #tpu.memory_space<vmem>>, %arg11: memref<1x128xf32, #tpu.memory_space<vmem>>, %arg12: memref<128x128xbf16, #tpu.memory_space<vmem>>, %arg13: memref<1x128xf32, #tpu.memory_space<vmem>>, %arg14: memref<1x128xf32, #tpu.memory_space<vmem>>, %arg15: memref<1x1xf32, #tpu.memory_space<vmem>>, %arg16: memref<128x128xbf16, #tpu.memory_space<vmem>>, %arg17: memref<1x128xf32, #tpu.memory_space<vmem>>, %arg18: memref<2x384xf32, #tpu.memory_space<vmem>>) attributes {dimension_semantics = [#tpu.dimension_semantics<parallel>], iteration_bounds = array<i64: 1>, scalar_prefetch = 0 : i64, scratch_operands = 0 : i64, tpu.core_type = #tpu.core_type<tc>, window_params = [{transform_indices = @transform_0, window_bounds = array<i64: 32, 32>}, {pipeline_mode = #tpu.pipeline_mode<synchronous>, transform_indices = @transform_1, window_bounds = array<i64: 32, 128>}, {pipeline_mode = #tpu.pipeline_mode<synchronous>, transform_indices = @transform_2, window_bounds = array<i64: 1, 128>}, {pipeline_mode = #tpu.pipeline_mode<synchronous>, transform_indices = @transform_3, window_bounds = array<i64: 128, 256>}, {pipeline_mode = #tpu.pipeline_mode<synchronous>, transform_indices = @transform_4, window_bounds = array<i64: 1, 256>}, {pipeline_mode = #tpu.pipeline_mode<synchronous>, transform_indices = @transform_5, window_bounds = array<i64: 128, 128>}, {pipeline_mode = #tpu.pipeline_mode<synchronous>, transform_indices = @transform_6, window_bounds = array<i64: 1, 128>}, {pipeline_mode = #tpu.pipeline_mode<synchronous>, transform_indices = @transform_7, window_bounds = array<i64: 1, 128>}, {pipeline_mode = #tpu.pipeline_mode<synchronous>, transform_indices = @transform_8, window_bounds = array<i64: 1, 1>}, {pipeline_mode = #tpu.pipeline_mode<synchronous>, transform_indices = @transform_9, window_bounds = array<i64: 128, 128>}, {pipeline_mode = #tpu.pipeline_mode<synchronous>, transform_indices = @transform_10, window_bounds = array<i64: 1, 128>}, {pipeline_mode = #tpu.pipeline_mode<synchronous>, transform_indices = @transform_11, window_bounds = array<i64: 128, 128>}, {pipeline_mode = #tpu.pipeline_mode<synchronous>, transform_indices = @transform_12, window_bounds = array<i64: 1, 128>}, {pipeline_mode = #tpu.pipeline_mode<synchronous>, transform_indices = @transform_13, window_bounds = array<i64: 1, 128>}, {pipeline_mode = #tpu.pipeline_mode<synchronous>, transform_indices = @transform_14, window_bounds = array<i64: 1, 1>}, {pipeline_mode = #tpu.pipeline_mode<synchronous>, transform_indices = @transform_15, window_bounds = array<i64: 128, 128>}, {pipeline_mode = #tpu.pipeline_mode<synchronous>, transform_indices = @transform_16, window_bounds = array<i64: 1, 128>}, {transform_indices = @transform_17, window_bounds = array<i64: 2, 384>}]} {
    %c0 = arith.constant 0 : index
    %c0_0 = arith.constant 0 : index
    %0 = vector.load %arg1[%c0, %c0_0] : memref<32x32xbf16, #tpu.memory_space<vmem>>, vector<32x32xbf16>
    %c0_1 = arith.constant 0 : index
    %c0_2 = arith.constant 0 : index
    %1 = vector.load %arg2[%c0_1, %c0_2] : memref<32x128xbf16, #tpu.memory_space<vmem>>, vector<32x128xbf16>
    %cst = arith.constant dense<0.000000e+00> : vector<32x128xf32>
    %2 = tpu.matmul %0, %1, %cst {dimension_numbers = #tpu.dot_dimension_numbers<[1], [0], [0], [1], [0, 0, 1, 1], [], []>} : vector<32x32xbf16>, vector<32x128xbf16>, vector<32x128xf32> -> vector<32x128xf32>
    %c0_3 = arith.constant 0 : index
    %c0_4 = arith.constant 0 : index
    %3 = vector.load %arg3[%c0_3, %c0_4] : memref<1x128xf32, #tpu.memory_space<vmem>>, vector<1x128xf32>
    %4 = vector.broadcast %3 : vector<1x128xf32> to vector<32x128xf32>
    %5 = arith.addf %2, %4 : vector<32x128xf32>
    %6 = math.tanh %5 : vector<32x128xf32>
    %7 = vector.shape_cast %6 : vector<32x128xf32> to vector<2x16x128xf32>
    %cst_5 = arith.constant dense<0.000000e+00> : vector<2x128xf32>
    %8 = vector.multi_reduction <add>, %7, %cst_5 [1] : vector<2x16x128xf32> to vector<2x128xf32>
    %cst_6 = arith.constant 6.250000e-02 : f32
    %9 = vector.broadcast %cst_6 : f32 to vector<2x128xf32>
    %10 = arith.mulf %8, %9 : vector<2x128xf32>
    %11 = arith.truncf %6 : vector<32x128xf32> to vector<32x128xbf16>
    %12 = vector.shape_cast %11 : vector<32x128xbf16> to vector<2x16x128xbf16>
    %c0_7 = arith.constant 0 : index
    %c0_8 = arith.constant 0 : index
    %13 = vector.load %arg4[%c0_7, %c0_8] : memref<128x256xbf16, #tpu.memory_space<vmem>>, vector<128x256xbf16>
    %cst_9 = arith.constant dense<0.000000e+00> : vector<32x256xf32>
    %14 = tpu.matmul %11, %13, %cst_9 {dimension_numbers = #tpu.dot_dimension_numbers<[1], [0], [0], [1], [0, 0, 1, 1], [], []>} : vector<32x128xbf16>, vector<128x256xbf16>, vector<32x256xf32> -> vector<32x256xf32>
    %c0_10 = arith.constant 0 : index
    %c0_11 = arith.constant 0 : index
    %15 = vector.load %arg5[%c0_10, %c0_11] : memref<1x256xf32, #tpu.memory_space<vmem>>, vector<1x256xf32>
    %16 = vector.broadcast %15 : vector<1x256xf32> to vector<32x256xf32>
    %17 = arith.addf %14, %16 : vector<32x256xf32>
    %18 = math.tanh %17 : vector<32x256xf32>
    %19 = vector.extract_strided_slice %18 {offsets = [0, 0], sizes = [32, 128], strides = [1, 1]} : vector<32x256xf32> to vector<32x128xf32>
    %20 = vector.shape_cast %19 : vector<32x128xf32> to vector<2x16x128xf32>
    %21 = vector.extract_strided_slice %18 {offsets = [0, 128], sizes = [32, 128], strides = [1, 1]} : vector<32x256xf32> to vector<32x128xf32>
    %22 = vector.shape_cast %21 : vector<32x128xf32> to vector<2x16x128xf32>
    %c0_12 = arith.constant 0 : index
    %c0_13 = arith.constant 0 : index
    %23 = vector.load %arg6[%c0_12, %c0_13] : memref<128x128xbf16, #tpu.memory_space<vmem>>, vector<128x128xbf16>
    %c0_14 = arith.constant 0 : index
    %c0_15 = arith.constant 0 : index
    %24 = vector.load %arg7[%c0_14, %c0_15] : memref<1x128xf32, #tpu.memory_space<vmem>>, vector<1x128xf32>
    %c0_16 = arith.constant 0 : index
    %c0_17 = arith.constant 0 : index
    %25 = vector.load %arg8[%c0_16, %c0_17] : memref<1x128xf32, #tpu.memory_space<vmem>>, vector<1x128xf32>
    %c0_18 = arith.constant 0 : index
    %c0_19 = arith.constant 0 : index
    %26 = vector.load %arg9[%c0_18, %c0_19] : memref<1x1xf32, #tpu.memory_space<vmem>>, vector<1x1xf32>
    %c0_20 = arith.constant 0 : index
    %c0_21 = arith.constant 0 : index
    %27 = vector.load %arg10[%c0_20, %c0_21] : memref<128x128xbf16, #tpu.memory_space<vmem>>, vector<128x128xbf16>
    %c0_22 = arith.constant 0 : index
    %c0_23 = arith.constant 0 : index
    %28 = vector.load %arg11[%c0_22, %c0_23] : memref<1x128xf32, #tpu.memory_space<vmem>>, vector<1x128xf32>
    %29 = arith.truncf %10 : vector<2x128xf32> to vector<2x128xbf16>
    %cst_24 = arith.constant dense<0.000000e+00> : vector<2x128xf32>
    %30 = tpu.matmul %29, %23, %cst_24 {dimension_numbers = #tpu.dot_dimension_numbers<[1], [0], [0], [1], [0, 0, 1, 1], [], []>} : vector<2x128xbf16>, vector<128x128xbf16>, vector<2x128xf32> -> vector<2x128xf32>
    %31 = vector.broadcast %24 : vector<1x128xf32> to vector<2x128xf32>
    %32 = arith.addf %30, %31 : vector<2x128xf32>
    %33 = math.tanh %32 : vector<2x128xf32>
    %34 = vector.shape_cast %33 : vector<2x128xf32> to vector<2x1x128xf32>
    %35 = vector.broadcast %34 : vector<2x1x128xf32> to vector<2x16x128xf32>
    %36 = arith.mulf %35, %20 : vector<2x16x128xf32>
    %37 = vector.shape_cast %25 : vector<1x128xf32> to vector<1x1x128xf32>
    %38 = vector.broadcast %37 : vector<1x1x128xf32> to vector<2x16x128xf32>
    %39 = arith.mulf %36, %38 : vector<2x16x128xf32>
    %cst_25 = arith.constant dense<0.000000e+00> : vector<2x16xf32>
    %40 = vector.multi_reduction <add>, %39, %cst_25 [2] : vector<2x16x128xf32> to vector<2x16xf32>
    %41 = vector.broadcast %26 : vector<1x1xf32> to vector<2x16xf32>
    %42 = arith.addf %40, %41 : vector<2x16xf32>
    %cst_26 = arith.constant dense<0xFF800000> : vector<2xf32>
    %43 = vector.multi_reduction <maximumf>, %42, %cst_26 [1] : vector<2x16xf32> to vector<2xf32>
    %44 = vector.shape_cast %43 : vector<2xf32> to vector<2x1xf32>
    %45 = vector.broadcast %44 : vector<2x1xf32> to vector<2x16xf32>
    %46 = arith.subf %42, %45 : vector<2x16xf32>
    %47 = math.exp %46 : vector<2x16xf32>
    %cst_27 = arith.constant dense<0.000000e+00> : vector<2xf32>
    %48 = vector.multi_reduction <add>, %47, %cst_27 [1] : vector<2x16xf32> to vector<2xf32>
    %49 = vector.shape_cast %48 : vector<2xf32> to vector<2x1xf32>
    %50 = tpu.reciprocal %49 {approx = true} : vector<2x1xf32> -> vector<2x1xf32>
    %51 = vector.broadcast %50 : vector<2x1xf32> to vector<2x16xf32>
    %52 = arith.mulf %47, %51 : vector<2x16xf32>
    %53 = arith.truncf %52 : vector<2x16xf32> to vector<2x16xbf16>
    %54 = vector.shape_cast %53 : vector<2x16xbf16> to vector<2x1x16xbf16>
    %cst_28 = arith.constant dense<0.000000e+00> : vector<2x1x128xf32>
    %55 = tpu.matmul %54, %12, %cst_28 {dimension_numbers = #tpu.dot_dimension_numbers<[2], [1], [1], [2], [0, 0, 0, 1, 1, 2], [0], [0]>} : vector<2x1x16xbf16>, vector<2x16x128xbf16>, vector<2x1x128xf32> -> vector<2x1x128xf32>
    %56 = vector.shape_cast %55 : vector<2x1x128xf32> to vector<2x128xf32>
    %57 = arith.truncf %56 : vector<2x128xf32> to vector<2x128xbf16>
    %cst_29 = arith.constant dense<0.000000e+00> : vector<2x128xf32>
    %58 = tpu.matmul %57, %27, %cst_29 {dimension_numbers = #tpu.dot_dimension_numbers<[1], [0], [0], [1], [0, 0, 1, 1], [], []>} : vector<2x128xbf16>, vector<128x128xbf16>, vector<2x128xf32> -> vector<2x128xf32>
    %59 = vector.broadcast %28 : vector<1x128xf32> to vector<2x128xf32>
    %60 = arith.addf %58, %59 : vector<2x128xf32>
    %61 = math.tanh %60 : vector<2x128xf32>
    %c0_30 = arith.constant 0 : index
    %c0_31 = arith.constant 0 : index
    %62 = vector.load %arg12[%c0_30, %c0_31] : memref<128x128xbf16, #tpu.memory_space<vmem>>, vector<128x128xbf16>
    %c0_32 = arith.constant 0 : index
    %c0_33 = arith.constant 0 : index
    %63 = vector.load %arg13[%c0_32, %c0_33] : memref<1x128xf32, #tpu.memory_space<vmem>>, vector<1x128xf32>
    %c0_34 = arith.constant 0 : index
    %c0_35 = arith.constant 0 : index
    %64 = vector.load %arg14[%c0_34, %c0_35] : memref<1x128xf32, #tpu.memory_space<vmem>>, vector<1x128xf32>
    %c0_36 = arith.constant 0 : index
    %c0_37 = arith.constant 0 : index
    %65 = vector.load %arg15[%c0_36, %c0_37] : memref<1x1xf32, #tpu.memory_space<vmem>>, vector<1x1xf32>
    %c0_38 = arith.constant 0 : index
    %c0_39 = arith.constant 0 : index
    %66 = vector.load %arg16[%c0_38, %c0_39] : memref<128x128xbf16, #tpu.memory_space<vmem>>, vector<128x128xbf16>
    %c0_40 = arith.constant 0 : index
    %c0_41 = arith.constant 0 : index
    %67 = vector.load %arg17[%c0_40, %c0_41] : memref<1x128xf32, #tpu.memory_space<vmem>>, vector<1x128xf32>
    %68 = arith.truncf %61 : vector<2x128xf32> to vector<2x128xbf16>
    %cst_42 = arith.constant dense<0.000000e+00> : vector<2x128xf32>
    %69 = tpu.matmul %68, %62, %cst_42 {dimension_numbers = #tpu.dot_dimension_numbers<[1], [0], [0], [1], [0, 0, 1, 1], [], []>} : vector<2x128xbf16>, vector<128x128xbf16>, vector<2x128xf32> -> vector<2x128xf32>
    %70 = vector.broadcast %63 : vector<1x128xf32> to vector<2x128xf32>
    %71 = arith.addf %69, %70 : vector<2x128xf32>
    %72 = math.tanh %71 : vector<2x128xf32>
    %73 = vector.shape_cast %72 : vector<2x128xf32> to vector<2x1x128xf32>
    %74 = vector.broadcast %73 : vector<2x1x128xf32> to vector<2x16x128xf32>
    %75 = arith.mulf %74, %22 : vector<2x16x128xf32>
    %76 = vector.shape_cast %64 : vector<1x128xf32> to vector<1x1x128xf32>
    %77 = vector.broadcast %76 : vector<1x1x128xf32> to vector<2x16x128xf32>
    %78 = arith.mulf %75, %77 : vector<2x16x128xf32>
    %cst_43 = arith.constant dense<0.000000e+00> : vector<2x16xf32>
    %79 = vector.multi_reduction <add>, %78, %cst_43 [2] : vector<2x16x128xf32> to vector<2x16xf32>
    %80 = vector.broadcast %65 : vector<1x1xf32> to vector<2x16xf32>
    %81 = arith.addf %79, %80 : vector<2x16xf32>
    %cst_44 = arith.constant dense<0xFF800000> : vector<2xf32>
    %82 = vector.multi_reduction <maximumf>, %81, %cst_44 [1] : vector<2x16xf32> to vector<2xf32>
    %83 = vector.shape_cast %82 : vector<2xf32> to vector<2x1xf32>
    %84 = vector.broadcast %83 : vector<2x1xf32> to vector<2x16xf32>
    %85 = arith.subf %81, %84 : vector<2x16xf32>
    %86 = math.exp %85 : vector<2x16xf32>
    %cst_45 = arith.constant dense<0.000000e+00> : vector<2xf32>
    %87 = vector.multi_reduction <add>, %86, %cst_45 [1] : vector<2x16xf32> to vector<2xf32>
    %88 = vector.shape_cast %87 : vector<2xf32> to vector<2x1xf32>
    %89 = tpu.reciprocal %88 {approx = true} : vector<2x1xf32> -> vector<2x1xf32>
    %90 = vector.broadcast %89 : vector<2x1xf32> to vector<2x16xf32>
    %91 = arith.mulf %86, %90 : vector<2x16xf32>
    %92 = arith.truncf %91 : vector<2x16xf32> to vector<2x16xbf16>
    %93 = vector.shape_cast %92 : vector<2x16xbf16> to vector<2x1x16xbf16>
    %cst_46 = arith.constant dense<0.000000e+00> : vector<2x1x128xf32>
    %94 = tpu.matmul %93, %12, %cst_46 {dimension_numbers = #tpu.dot_dimension_numbers<[2], [1], [1], [2], [0, 0, 0, 1, 1, 2], [0], [0]>} : vector<2x1x16xbf16>, vector<2x16x128xbf16>, vector<2x1x128xf32> -> vector<2x1x128xf32>
    %95 = vector.shape_cast %94 : vector<2x1x128xf32> to vector<2x128xf32>
    %96 = arith.truncf %95 : vector<2x128xf32> to vector<2x128xbf16>
    %cst_47 = arith.constant dense<0.000000e+00> : vector<2x128xf32>
    %97 = tpu.matmul %96, %66, %cst_47 {dimension_numbers = #tpu.dot_dimension_numbers<[1], [0], [0], [1], [0, 0, 1, 1], [], []>} : vector<2x128xbf16>, vector<128x128xbf16>, vector<2x128xf32> -> vector<2x128xf32>
    %98 = vector.broadcast %67 : vector<1x128xf32> to vector<2x128xf32>
    %99 = arith.addf %97, %98 : vector<2x128xf32>
    %100 = math.tanh %99 : vector<2x128xf32>
    %101 = arith.mulf %10, %10 : vector<2x128xf32>
    %102 = arith.mulf %61, %61 : vector<2x128xf32>
    %103 = arith.addf %101, %102 : vector<2x128xf32>
    %104 = arith.mulf %100, %100 : vector<2x128xf32>
    %105 = arith.addf %103, %104 : vector<2x128xf32>
    %cst_48 = arith.constant dense<0.000000e+00> : vector<2xf32>
    %106 = vector.multi_reduction <add>, %105, %cst_48 [1] : vector<2x128xf32> to vector<2xf32>
    %107 = vector.shape_cast %106 : vector<2xf32> to vector<2x1xf32>
    %cst_49 = arith.constant 9.99999996E-13 : f32
    %108 = vector.broadcast %cst_49 : f32 to vector<2x1xf32>
    %109 = arith.addf %107, %108 : vector<2x1xf32>
    %110 = math.rsqrt %109 : vector<2x1xf32>
    %111 = vector.broadcast %110 : vector<2x1xf32> to vector<2x128xf32>
    %112 = arith.mulf %10, %111 : vector<2x128xf32>
    %113 = vector.broadcast %110 : vector<2x1xf32> to vector<2x128xf32>
    %114 = arith.mulf %61, %113 : vector<2x128xf32>
    %115 = vector.broadcast %110 : vector<2x1xf32> to vector<2x128xf32>
    %116 = arith.mulf %100, %115 : vector<2x128xf32>
    %c0_50 = arith.constant 0 : index
    %c0_51 = arith.constant 0 : index
    %117 = vector.load %arg18[%c0_50, %c0_51] : memref<2x384xf32, #tpu.memory_space<vmem>>, vector<2x128xf32>
    tpu.vector_store %arg18[%c0_50, %c0_51], %112 {strides = array<i32>} : memref<2x384xf32, #tpu.memory_space<vmem>>, vector<2x128xf32>,
    %c0_52 = arith.constant 0 : index
    %c128 = arith.constant 128 : index
    %118 = vector.load %arg18[%c0_52, %c128] : memref<2x384xf32, #tpu.memory_space<vmem>>, vector<2x128xf32>
    tpu.vector_store %arg18[%c0_52, %c128], %114 {strides = array<i32>} : memref<2x384xf32, #tpu.memory_space<vmem>>, vector<2x128xf32>,
    %c0_53 = arith.constant 0 : index
    %c256 = arith.constant 256 : index
    %119 = vector.load %arg18[%c0_53, %c256] : memref<2x384xf32, #tpu.memory_space<vmem>>, vector<2x128xf32>
    tpu.vector_store %arg18[%c0_53, %c256], %116 {strides = array<i32>} : memref<2x384xf32, #tpu.memory_space<vmem>>, vector<2x128xf32>,
    return
  }
  func.func @transform_0(%arg0: i32) -> (i32, i32) {
    %c0_i32 = arith.constant 0 : i32
    %c0_i32_0 = arith.constant 0 : i32
    return %arg0, %c0_i32 : i32, i32
  }
  func.func @transform_1(%arg0: i32) -> (i32, i32) {
    %c0_i32 = arith.constant 0 : i32
    %c0_i32_0 = arith.constant 0 : i32
    %c0_i32_1 = arith.constant 0 : i32
    return %c0_i32, %c0_i32_0 : i32, i32
  }
  func.func @transform_2(%arg0: i32) -> (i32, i32) {
    %c0_i32 = arith.constant 0 : i32
    %c0_i32_0 = arith.constant 0 : i32
    %c0_i32_1 = arith.constant 0 : i32
    return %c0_i32, %c0_i32_0 : i32, i32
  }
  func.func @transform_3(%arg0: i32) -> (i32, i32) {
    %c0_i32 = arith.constant 0 : i32
    %c0_i32_0 = arith.constant 0 : i32
    %c0_i32_1 = arith.constant 0 : i32
    return %c0_i32, %c0_i32_0 : i32, i32
  }
  func.func @transform_4(%arg0: i32) -> (i32, i32) {
    %c0_i32 = arith.constant 0 : i32
    %c0_i32_0 = arith.constant 0 : i32
    %c0_i32_1 = arith.constant 0 : i32
    return %c0_i32, %c0_i32_0 : i32, i32
  }
  func.func @transform_5(%arg0: i32) -> (i32, i32) {
    %c0_i32 = arith.constant 0 : i32
    %c0_i32_0 = arith.constant 0 : i32
    %c0_i32_1 = arith.constant 0 : i32
    return %c0_i32, %c0_i32_0 : i32, i32
  }
  func.func @transform_6(%arg0: i32) -> (i32, i32) {
    %c0_i32 = arith.constant 0 : i32
    %c0_i32_0 = arith.constant 0 : i32
    %c0_i32_1 = arith.constant 0 : i32
    return %c0_i32, %c0_i32_0 : i32, i32
  }
  func.func @transform_7(%arg0: i32) -> (i32, i32) {
    %c0_i32 = arith.constant 0 : i32
    %c0_i32_0 = arith.constant 0 : i32
    %c0_i32_1 = arith.constant 0 : i32
    return %c0_i32, %c0_i32_0 : i32, i32
  }
  func.func @transform_8(%arg0: i32) -> (i32, i32) {
    %c0_i32 = arith.constant 0 : i32
    %c0_i32_0 = arith.constant 0 : i32
    %c0_i32_1 = arith.constant 0 : i32
    return %c0_i32, %c0_i32_0 : i32, i32
  }
  func.func @transform_9(%arg0: i32) -> (i32, i32) {
    %c0_i32 = arith.constant 0 : i32
    %c0_i32_0 = arith.constant 0 : i32
    %c0_i32_1 = arith.constant 0 : i32
    return %c0_i32, %c0_i32_0 : i32, i32
  }
  func.func @transform_10(%arg0: i32) -> (i32, i32) {
    %c0_i32 = arith.constant 0 : i32
    %c0_i32_0 = arith.constant 0 : i32
    %c0_i32_1 = arith.constant 0 : i32
    return %c0_i32, %c0_i32_0 : i32, i32
  }
  func.func @transform_11(%arg0: i32) -> (i32, i32) {
    %c0_i32 = arith.constant 0 : i32
    %c0_i32_0 = arith.constant 0 : i32
    %c0_i32_1 = arith.constant 0 : i32
    return %c0_i32, %c0_i32_0 : i32, i32
  }
  func.func @transform_12(%arg0: i32) -> (i32, i32) {
    %c0_i32 = arith.constant 0 : i32
    %c0_i32_0 = arith.constant 0 : i32
    %c0_i32_1 = arith.constant 0 : i32
    return %c0_i32, %c0_i32_0 : i32, i32
  }
  func.func @transform_13(%arg0: i32) -> (i32, i32) {
    %c0_i32 = arith.constant 0 : i32
    %c0_i32_0 = arith.constant 0 : i32
    %c0_i32_1 = arith.constant 0 : i32
    return %c0_i32, %c0_i32_0 : i32, i32
  }
  func.func @transform_14(%arg0: i32) -> (i32, i32) {
    %c0_i32 = arith.constant 0 : i32
    %c0_i32_0 = arith.constant 0 : i32
    %c0_i32_1 = arith.constant 0 : i32
    return %c0_i32, %c0_i32_0 : i32, i32
  }
  func.func @transform_15(%arg0: i32) -> (i32, i32) {
    %c0_i32 = arith.constant 0 : i32
    %c0_i32_0 = arith.constant 0 : i32
    %c0_i32_1 = arith.constant 0 : i32
    return %c0_i32, %c0_i32_0 : i32, i32
  }
  func.func @transform_16(%arg0: i32) -> (i32, i32) {
    %c0_i32 = arith.constant 0 : i32
    %c0_i32_0 = arith.constant 0 : i32
    %c0_i32_1 = arith.constant 0 : i32
    return %c0_i32, %c0_i32_0 : i32, i32
  }
  func.func @transform_17(%arg0: i32) -> (i32, i32) {
    %c0_i32 = arith.constant 0 : i32
    %c0_i32_0 = arith.constant 0 : i32
    return %arg0, %c0_i32 : i32, i32
  }
}

</mosaic_0001>

<bundles_post_ra>
// kernel: tpu_custom_call.1
= control target key start
LH: loop header
LB: loop body
LE: loop exit
PB: predicated region body
PF: predicated region fallthrough
CT: control target
= control target key end

     0   :  { %s2509_s0 = inlined_call_operand.hbm [shape: bf16[32,32], index: 0, kind: input, shape index: {}]   ;;  %s2510_s1 = inlined_call_operand.hbm [shape: bf16[32,128], index: 1, kind: input, shape index: {}]   ;;  %s2511_s2 = inlined_call_operand.vmem [shape: f32[1,128], index: 2, kind: input, shape index: {}]   ;;  %s2512_s3 = inlined_call_operand.hbm [shape: bf16[128,256], index: 3, kind: input, shape index: {}]   ;;  %s2513_s4 = inlined_call_operand.vmem [shape: f32[1,256], index: 4, kind: input, shape index: {}]   ;;  %s2514_s5 = inlined_call_operand.hbm [shape: bf16[128,128], index: 5, kind: input, shape index: {}]   ;;  %s2515_s6 = inlined_call_operand.vmem [shape: f32[1,128], index: 6, kind: input, shape index: {}]   ;;  %s2516_s7 = inlined_call_operand.vmem [shape: f32[1,128], index: 7, kind: input, shape index: {}]   ;;  %s2517_s8 = inlined_call_operand.<no memory space> [shape: f32[1,1], index: 8, kind: input, shape index: {}]   ;;  %s2518_s9 = inlined_call_operand.hbm [shape: bf16[128,128], index: 9, kind: input, shape index: {}]   ;;  %s2519_s10 = inlined_call_operand.vmem [shape: f32[1,128], index: 10, kind: input, shape index: {}]   ;;  %s2520_s11 = inlined_call_operand.hbm [shape: bf16[128,128], index: 11, kind: input, shape index: {}]   ;;  %s2521_s12 = inlined_call_operand.vmem [shape: f32[1,128], index: 12, kind: input, shape index: {}]   ;;  %s2522_s13 = inlined_call_operand.vmem [shape: f32[1,128], index: 13, kind: input, shape index: {}]   ;;  %s2523_s15 = inlined_call_operand.hbm [shape: bf16[128,128], index: 15, kind: input, shape index: {}]   ;;  %s2524_s16 = inlined_call_operand.vmem [shape: f32[1,128], index: 16, kind: input, shape index: {}]   ;;  %s2525_s17 = inlined_call_operand.hbm [shape: f32[2,384], index: 17, kind: output, shape index: {}]   ;;  %s2526_s14 = inlined_call_operand.<no memory space> [shape: f32[1,1], index: 14, kind: input, shape index: {}]  }
   0x1   :  { %2527 = sst [smem:[#allocation22_spill]] %s2509_s0  ;;  %v22_v0 = vstv %s2517_s8  ;;  %v24_v1 = vstv %s2526_s14 }
   0x2   :  { %2528 = sst [smem:[#allocation23_spill]] %s2510_s1  ;;  %23 = vst [vmem:[#allocation2] sm:$0x1] %v22_v0  ;;  %25 = vst [vmem:[#allocation3] sm:$0x1] %v24_v1 }
   0x3   :  { %26 = vsyncpa [#allocation5], 0 }
   0x4   :  { %27 = vsyncpa [#allocation8], 0 }
   0x5   :  { %28 = vsyncpa [#allocation11], 0 }
   0x6   :  { %29 = vsyncpa [#allocation14], 0 }
   0x7   :  { %30 = vsyncpa [#allocation6], 0  ;;  %s2143_s28 = smov [#allocation7]   ;;  %s2144_s0 = smov [#allocation10]  }
   0x8   :  { %s48_s29 = sshll.u32 %s2143_s28, 4  ;;  %s76_s30 = sshll.u32 %s2144_s0, 4  ;;  %s49_s29 = int_to_ptr.vmem [resolvable:$true] %s48_s29  ;;  %s77_s30 = int_to_ptr.vmem [resolvable:$true] %s76_s30 }
   0x9   :  { %s1981_s18 = scalar_lea.vmem %s49_s29, 256  ;;  %p1986_p1 = scmp.lt.s32.totalorder %s49_s29, %s49_s29 }
   0xa   :  { %p1982_p0 = scmp.ne.s32.totalorder %s49_s29, %s1981_s18  ;;  %p1987_p2 = scmp.lt.s32.totalorder %s1981_s18, %s1981_s18 }
   0xc   :  { %p1988_p3 = por %p1987_p2, %p1986_p1 }
   0xe   :  { %p1989_p4 = pnand %p1988_p3, %p1982_p0 }
  0x10   :  { %1992 = shalt.err (!%p1989_p4)
}
  0x11   :  { %s2145_s8 = smov 64   ;;  %s2146_s14 = smov 4  }
  0x12   :  { %s2529_s20 = sld [smem:[#allocation23_spill]]  ;;  %s2001_s21 = scalar_lea.vmem %s77_s30, 1024 }
  0x13   :  { %p2002_p5 = scmp.ne.s32.totalorder %s77_s30, %s2001_s21  ;;  %p2006_p6 = scmp.lt.s32.totalorder %s77_s30, %s77_s30 }
  0x14   :  { %p2007_p7 = scmp.lt.s32.totalorder %s2001_s21, %s2001_s21 }
  0x16   :  { %p2008_p8 = por %p2007_p7, %p2006_p6 }
  0x18   :  { %54 = dma.hbm_to_vmem [thread:$0]  %s2529_s20, 256, %s49_s29, [#allocation8], %s2145_s8, %s2145_s8, %s2146_s14  }
  0x19   :  { %p2009_p9 = pnand %p2008_p8, %p2002_p5 }
  0x1b   :  { %2012 = shalt.err (!%p2009_p9)
}
  0x1c   :  { %82 = dma.hbm_to_vmem [thread:$0]  %s2514_s5, 1024, %s77_s30, [#allocation11], %s2145_s8, %s2145_s8, %s2146_s14  }
  0x1d   :  { %s2147_s24 = smov [#allocation13]   ;;  %s2148_s26 = smov [#allocation4]  }
  0x1e   :  { %s108_s25 = sshll.u32 %s2147_s24, 4  ;;  %s36_s27 = sshll.u32 %s2148_s26, 4  ;;  %s109_s25 = int_to_ptr.vmem [resolvable:$true] %s108_s25  ;;  %s37_s27 = int_to_ptr.vmem [resolvable:$true] %s36_s27 }
  0x1f   :  { %s2021_s28 = scalar_lea.vmem %s109_s25, 1024  ;;  %p2026_p11 = scmp.lt.s32.totalorder %s109_s25, %s109_s25 }
  0x20   :  { %p2022_p10 = scmp.ne.s32.totalorder %s109_s25, %s2021_s28  ;;  %p2027_p12 = scmp.lt.s32.totalorder %s2021_s28, %s2021_s28 }
  0x22   :  { %p2028_p13 = por %p2027_p12, %p2026_p11 }
  0x24   :  { %p2029_p0 = pnand %p2028_p13, %p2022_p10 }
  0x26   :  { %2032 = shalt.err (!%p2029_p0)
}
  0x27   :  { %114 = dma.hbm_to_vmem [thread:$0]  %s2520_s11, 1024, %s109_s25, [#allocation14], %s2145_s8, %s2145_s8, %s2146_s14  }
  0x28   :  { %s2041_s5 = scalar_lea.vmem %s37_s27, 256  ;;  %p2046_p2 = scmp.lt.s32.totalorder %s37_s27, %s37_s27 }
  0x29   :  { %p2042_p1 = scmp.ne.s32.totalorder %s37_s27, %s2041_s5  ;;  %p2047_p3 = scmp.lt.s32.totalorder %s2041_s5, %s2041_s5 }
  0x2b   :  { %p2048_p4 = por %p2047_p3, %p2046_p2 }
  0x2d   :  { %p2049_p5 = pnand %p2048_p4, %p2042_p1 }
  0x2f   :  { %2052 = shalt.err (!%p2049_p5)
}
  0x30   :  { %s2530_s19 = sld [smem:[#allocation22_spill]]  ;;  %s2149_s1 = smov [#allocation9]  }
  0x31   :  { %s62_s20 = sshll.u32 %s2149_s1, 4  ;;  %s63_s20 = int_to_ptr.vmem [resolvable:$true] %s62_s20 }
  0x32   :  { %s2061_s21 = scalar_lea.vmem %s63_s20, 2048  ;;  %p2066_p7 = scmp.lt.s32.totalorder %s63_s20, %s63_s20 }
  0x33   :  { %p2062_p6 = scmp.ne.s32.totalorder %s63_s20, %s2061_s21  ;;  %p2067_p8 = scmp.lt.s32.totalorder %s2061_s21, %s2061_s21 }
  0x35   :  { %p2068_p9 = por %p2067_p8, %p2066_p7 }
  0x36   :  { %42 = dma.hbm_to_vmem [thread:$0]  %s2530_s19, 256, %s37_s27, [#allocation5], %s2145_s8, %s2145_s8, %s2146_s14  }
  0x37   :  { %p2069_p10 = pnand %p2068_p9, %p2062_p6 }
  0x39   :  { %2072 = shalt.err (!%p2069_p10)
}
  0x3a   :  { %s2150_s11 = smov 128   ;;  %s2151_s22 = smov 8  }
  0x3b   :  { %68 = dma.hbm_to_vmem [thread:$0]  %s2512_s3, 2048, %s63_s20, [#allocation8], %s2150_s11, %s2150_s11, %s2151_s22  }
  0x3c   :  { %s2152_s25 = smov [#allocation12]   ;;  %s2153_s27 = smov [#allocation15]  }
  0x3d   :  { %s94_s26 = sshll.u32 %s2152_s25, 4  ;;  %s126_s28 = sshll.u32 %s2153_s27, 4  ;;  %s95_s26 = int_to_ptr.vmem [resolvable:$true] %s94_s26  ;;  %s127_s28 = int_to_ptr.vmem [resolvable:$true] %s126_s28 }
  0x3e   :  { %s2081_s29 = scalar_lea.vmem %s95_s26, 1024  ;;  %p2086_p12 = scmp.lt.s32.totalorder %s95_s26, %s95_s26 }
  0x3f   :  { %p2082_p11 = scmp.ne.s32.totalorder %s95_s26, %s2081_s29  ;;  %p2087_p13 = scmp.lt.s32.totalorder %s2081_s29, %s2081_s29 }
  0x41   :  { %p2088_p0 = por %p2087_p13, %p2086_p12 }
  0x43   :  { %p2089_p1 = pnand %p2088_p0, %p2082_p11 }
  0x45   :  { %2092 = shalt.err (!%p2089_p1)
}
  0x46   :  { %100 = dma.hbm_to_vmem [thread:$0]  %s2518_s9, 1024, %s95_s26, [#allocation11], %s2145_s8, %s2145_s8, %s2146_s14  }
  0x47   :  { %s2101_s3 = scalar_lea.vmem %s127_s28, 1024  ;;  %p2106_p3 = scmp.lt.s32.totalorder %s127_s28, %s127_s28 }
  0x48   :  { %p2102_p2 = scmp.ne.s32.totalorder %s127_s28, %s2101_s3  ;;  %p2107_p4 = scmp.lt.s32.totalorder %s2101_s3, %s2101_s3 }
  0x4a   :  { %p2108_p5 = por %p2107_p4, %p2106_p3 }
  0x4c   :  { %p2109_p6 = pnand %p2108_p5, %p2102_p2 }
  0x4e   :  { %2112 = shalt.err (!%p2109_p6)
}
  0x4f   :  { %132 = dma.hbm_to_vmem [thread:$0]  %s2523_s15, 1024, %s127_s28, [#allocation14], %s2145_s8, %s2145_s8, %s2146_s14  }
  0x50   :  { %2133 = dma.done.wait [#allocation5], 256  }
  0x51   :  { %2134 = vsyncadd [#allocation5], 4294967040 }
  0x52   :  { %2135 = dma.done.wait [#allocation8], 2304  }
  0x53   :  { %2136 = vsyncadd [#allocation8], 4294964992 }
  0x54   :  { %2137 = dma.done.wait [#allocation11], 2048  }
  0x55   :  { %2138 = vsyncadd [#allocation11], 4294965248 }
  0x56   :  { %2139 = dma.done.wait [#allocation14], 2048  }
  0x57   :  { %2140 = vsyncadd [#allocation14], 4294965248  ;;  %v1859_v2 = vld [vmem:[#allocation7 + $0x8] sm:$0xff]   ;;  %v1860_v3 = vld [vmem:[#allocation7] sm:$0xff]   ;;  %vm194_vm0 = vcmask 261120   ;;  %v2154_v19 = vmov 0.0  }
  0x58   :  { %1728 = vmatprep.subr.bf16.mxu1 %v1859_v2  ;;  %v1861_v4 = vld [vmem:[#allocation4] sm:$0xff]   ;;  %v1862_v5 = vld [vmem:[#allocation4 + $0x8] sm:$0xff]   ;;  %v1865_v6 = vld [vmem:[#allocation9 + $0x74] ss:$8 sps:$4 sm:$0xff]   ;;  %1736 = vmatprep.subr.bf16.mxu0 %v2154_v19  ;;  %v2155_v26 = vmov 0   ;;  %vm2156_vm1 = vmmov 0  }
  0x59   :  { %1729 = vmatpush3.bf16.msra.mxu1 %v1859_v2  ;;  %1732 = vmatprep.mubr.msk.bf16.mxu1 %vm194_vm0, %v1861_v4  ;;  %v1863_v7 = vld [vmem:[#allocation9 + $0x70] ss:$8 sps:$4 sm:$0xff]   ;;  %v1868_v8 = vld [vmem:[#allocation9 + $0x64] ss:$8 sps:$4 sm:$0xff]   ;;  %v1866_v9 = vld [vmem:[#allocation9 + $0x60] ss:$8 sps:$4 sm:$0xff]  }
  0x5a   :  { %1730 = vmatprep.subr.bf16.mxu1 %v1860_v3  ;;  %v1871_v10 = vld [vmem:[#allocation9 + $0x54] ss:$8 sps:$4 sm:$0xff]   ;;  %v1869_v11 = vld [vmem:[#allocation9 + $0x50] ss:$8 sps:$4 sm:$0xff]   ;;  %v1874_v12 = vld [vmem:[#allocation9 + $0x44] ss:$8 sps:$4 sm:$0xff]   ;;  %1857 = vset.pattern.permute.xlu0 %v2155_v26 }
  0x5b   :  { %v1872_v13 = vld [vmem:[#allocation9 + $0x40] ss:$8 sps:$4 sm:$0xff]   ;;  %v1877_v14 = vld [vmem:[#allocation9 + $0x34] ss:$8 sps:$4 sm:$0xff]   ;;  %v1875_v15 = vld [vmem:[#allocation9 + $0x30] ss:$8 sps:$4 sm:$0xff]   ;;  %1858 = vset.pattern.permute.xlu1 %v2155_v26  ;;  %1752 = vmatprep.mubr.msk.bf16.mxu0 %vm2156_vm1, %v2154_v19 }
  0x5c   :  { %v1880_v16 = vld [vmem:[#allocation9 + $0x24] ss:$8 sps:$4 sm:$0xff]   ;;  %v1878_v17 = vld [vmem:[#allocation9 + $0x20] ss:$8 sps:$4 sm:$0xff]   ;;  %v1881_v18 = vld [vmem:[#allocation10 + $0x38] sm:$0xff]   ;;  %vm489_vm2 = vcmask 1041409  }
  0x5d   :  { %1731 = vmatpush3.bf16.msra.mxu1 %v1860_v3  ;;  %v1884_v20 = vld [vmem:[#allocation9 + $0x14] ss:$8 sps:$4 sm:$0xff]   ;;  %1737 = vmatpush3.bf16.msra.mxu0 %v1881_v18  ;;  %v1882_v21 = vld [vmem:[#allocation9 + $0x10] ss:$8 sps:$4 sm:$0xff]   ;;  %v1888_v23 = vld [vmem:[#allocation9 + $0x4] ss:$8 sps:$4 sm:$0xff]  }
  0x5e   :  { %380 = vmatprep.subr.bf16.mxu1 %v1865_v6  ;;  %1738 = vmatprep.subr.bf16.mxu0 %v2154_v19  ;;  %v1885_v22 = vld [vmem:[#allocation10 + $0x30] sm:$0xff]   ;;  %v1886_v24 = vld [vmem:[#allocation9] ss:$8 sps:$4 sm:$0xff]   ;;  %v1891_v28 = vld [vmem:[#allocation10 + $0x18] sm:$0xff]   ;;  %vm665_vm3 = vcmask 130112   ;;  %vm678_vm4 = vcmask 123904  }
  0x5f   :  { %v1889_v25 = vld [vmem:[#allocation10 + $0x28] sm:$0xff]   ;;  %v1890_v27 = vld [vmem:[#allocation10 + $0x20] sm:$0xff]   ;;  %v1892_v29 = vld [vmem:[#allocation10 + $0x10] sm:$0xff]   ;;  %vm781_vm5 = vcmask 130048   ;;  %vm1549_vm6 = vcmask 1041408   ;;  %vm1585_vm7 = vcmask 1043459  }
  0x60   :  { %1733 = vmatmul.mubr.msk.bf16.vlgmr.msra.gmra.mxu1 %vm194_vm0, %v1862_v5  ;;  %v1893_v30 = vld [vmem:[#allocation10 + $0x8] sm:$0xff]   ;;  %v1894_v31 = vld [vmem:[#allocation10] sm:$0xff]   ;;  %v1613_v32 = vld [vmem:[%s2511_s2] ss:$0 sm:$0xff]  ;;  %vm1587_vm8 = vcmask 1045509   ;;  %vm1589_vm9 = vcmask 1047559  }
  0x61   :  { %381 = vmatpush1.bf16.msra.mxu1 %v1863_v7  ;;  %1739 = vmatpush3.bf16.msra.mxu0 %v1885_v22  ;;  %v290_v7 = vlaneseq }
  0x62   :  { %382 = vmatprep.subr.bf16.mxu1 %v1868_v8  ;;  %1740 = vmatprep.subr.bf16.mxu0 %v2154_v19 }
  0x63   :  { %412 = vmatprep.mubr.bf16.mxu1 %v2155_v26 }
  0x65   :  { %383 = vmatpush1.bf16.msra.mxu1 %v1866_v9  ;;  %1741 = vmatpush3.bf16.msra.mxu0 %v1889_v25  ;;  %v2333_v9 = vshrl.u32 %v290_v7, 7 }
  0x66   :  { %384 = vmatprep.subr.bf16.mxu1 %v1871_v10  ;;  %1742 = vmatprep.subr.bf16.mxu0 %v2154_v19 }
  0x69   :  { %385 = vmatpush1.bf16.msra.mxu1 %v1869_v11  ;;  %1743 = vmatpush3.bf16.msra.mxu0 %v1890_v27  ;;  %v2338_v11 = vsub.s32 0, %v2333_v9 }
  0x6a   :  { %386 = vmatprep.subr.bf16.mxu1 %v1874_v12  ;;  %1744 = vmatprep.subr.bf16.mxu0 %v2154_v19  ;;  %v2343_v12 = vld [vmem:[%s2513_s4] sm:$0x3] }
  0x6d   :  { %387 = vmatpush1.bf16.msra.mxu1 %v1872_v13  ;;  %1745 = vmatpush3.bf16.msra.mxu0 %v1891_v28 }
  0x6e   :  { %388 = vmatprep.subr.bf16.mxu1 %v1877_v14  ;;  %1746 = vmatprep.subr.bf16.mxu0 %v2154_v19  ;;  %v1636_v14 = vld [vmem:[%s2515_s6] ss:$0 sm:$0xff] }
  0x71   :  { %389 = vmatpush1.bf16.msra.mxu1 %v1875_v15  ;;  %1747 = vmatpush3.bf16.msra.mxu0 %v1892_v29 }
  0x72   :  { %390 = vmatprep.subr.bf16.mxu1 %v1880_v16  ;;  %1748 = vmatprep.subr.bf16.mxu0 %v2154_v19  ;;  %v293_v16 = vrot.slane %v2343_v12, %v2338_v11 }
  0x75   :  { %391 = vmatpush1.bf16.msra.mxu1 %v1878_v17  ;;  %1749 = vmatpush3.bf16.msra.mxu0 %v1893_v30 }
  0x76   :  { %392 = vmatprep.subr.bf16.mxu1 %v1884_v20  ;;  %1750 = vmatprep.subr.bf16.mxu0 %v2154_v19 }
  0x79   :  { %393 = vmatpush1.bf16.msra.mxu1 %v1882_v21  ;;  %1751 = vmatpush3.bf16.msra.mxu0 %v1894_v31 }
  0x7a   :  { %394 = vmatprep.subr.bf16.mxu1 %v1888_v23  ;;  %1768 = vmatprep.subr.bf16.mxu0 %v2154_v19  ;;  %v2157_v23 = vmov 1966171168  }
  0x7d   :  { %395 = vmatpush1.bf16.msra.mxu1 %v1886_v24  ;;  %v584_v24 = vunpack.c.l.s4 %v2157_v23 }
  0x7e   :  { %1756 = vmatprep.subr.bf16.mxu1 %v2154_v19 }
  0x7f   :  { %v585_v30 = vunpack.c.0.s8 %v584_v24 }
  0x81   :  { %v2353_v31 = vsub.s32 %v585_v30, %v2333_v9 }
 0x120   :  { %v1734_v33 = vpop.f32.mrf.mxu1 }
 0x121   :  { %v244_v34 = vadd.f32 %v1734_v33, %v1613_v32 }
 0x122   :  { %v235_v35 = vpop.f32.mrf.mxu1 }
 0x123   :  { %v236_v36 = vadd.f32 %v1613_v32, %v235_v35  ;;  %1919 = vtanh.f32 %v244_v34 }
 0x124   :  { %v1735_v37 = vpop.f32.mrf.mxu1 }
 0x125   :  { %v247_v38 = vadd.f32 %v1735_v37, %v1613_v32 }
 0x126   :  { %v238_v39 = vpop.f32.mrf.mxu1 }
 0x127   :  { %1921 = vtanh.f32 %v247_v38  ;;  %v239_v40 = vadd.f32 %v1613_v32, %v238_v39  ;;  %v1645_v39 = vld [vmem:[%s2516_s7] ss:$0 sm:$0xff] }
 0x128   :  { %1923 = vtanh.f32 %v236_v36 }
 0x129   :  { %1925 = vtanh.f32 %v239_v40 }
 0x130   :  { %v1920_v41 = vpop.eup %1919 }
 0x134   :  { %v1922_v42 = vpop.eup %1921 }
 0x135   :  { %v1924_v43 = vpop.eup %1923  ;;  %v261_v44 = vadd.f32 %v1922_v42, %v1920_v41  ;;  %v2315_v55 = vpack.c.bf16 %v1922_v42, %v1920_v41 }
 0x136   :  { %v1926_v45 = vpop.eup %1925 }
 0x137   :  { %v262_v46 = vrot.slane %v261_v44, 4  ;;  %v254_v47 = vadd.f32 %v1926_v45, %v1924_v43  ;;  %v2310_v48 = vpack.c.bf16 %v1926_v45, %v1924_v43 }
 0x139   :  { %v263_v49 = vadd.f32 %v262_v46, %v261_v44  ;;  %v255_v50 = vrot.slane %v254_v47, 4  ;;  %413 = vmatmul.mubr.bf16.vlgmr.msra.gmra.mxu1 %v2310_v48 }
 0x13a   :  { %1757 = vmatpush3.bf16.msra.mxu1 %v2310_v48  ;;  %422 = vmatprep.mubr.bf16.mxu1 %v2155_v26 }
 0x13b   :  { %v256_v51 = vadd.f32 %v255_v50, %v254_v47  ;;  %v264_v52 = vrot.slane %v263_v49, 2  ;;  %1762 = vmatprep.subr.bf16.mxu1 %v2154_v19 }
 0x13d   :  { %v257_v53 = vrot.slane %v256_v51, 2  ;;  %v265_v54 = vadd.f32 %v264_v52, %v263_v49 }
 0x13f   :  { %v258_v56 = vadd.f32 %v257_v53, %v256_v51  ;;  %v266_v57 = vrot.slane %v265_v54, 1  ;;  %v1646_v53 = vld [vmem:[#allocation2] ss:$0 sm:$0xff] }
 0x141   :  { %423 = vmatmul.mubr.bf16.gmra.mxu1 %v2315_v55  ;;  %v259_v58 = vrot.slane %v258_v56, 1  ;;  %v267_v59 = vadd.f32 %v266_v57, %v265_v54 }
 0x142   :  { %1758 = vmatprep.mubr.msk.bf16.mxu1 %vm2156_vm1, %v2154_v19 }
 0x143   :  { %v260_v60 = vadd.f32 %v259_v58, %v258_v56  ;;  %v2320_v61 = vmul.f32 0.0625, %v267_v59  ;;  %v655_v56 = vand.u32 127, %v290_v7 }
 0x145   :  { %v2322_v62 = vmul.f32 0.0625, %v260_v60  ;;  %v478_v63 = vpack.c.bf16 %v2320_v61, %v2320_v61  ;;  %v660_v58 = vadd.s32 4294967288, %v655_v56  ;;  %v2364_v60 = vsub.s32 %v655_v56, %v2333_v9 }
 0x147   :  { %v477_v0 = vpack.c.bf16 %v2322_v62, %v2322_v62  ;;  %v488_v2 = vunpack.c.l.b16 %v478_v63  ;;  %v2367_v63 = vsub.s32 %v660_v58, %v2333_v9 }
 0x149   :  { %v487_v1 = vunpack.c.l.b16 %v477_v0 }
 0x14b   :  { %v490_v3 = vsel %vm489_vm2, %v488_v2, %v487_v1 }
 0x14c   :  { %v491_v4 = vpack.c.b16 %v490_v3, %v490_v3 }
 0x14e   :  { %1753 = vmatmul.mubr.bf16.vlgmr.msra.gmra.mxu0 %v491_v4 }
 0x14f   :  { %1784 = vmatprep.mubr.msk.bf16.mxu0 %vm2156_vm1, %v2154_v19 }
 0x1f9   :  { %v414_v5 = vpop.f32.mrf.mxu1 }
 0x1fa   :  { %v415_v22 = vadd.f32 %v414_v5, %v293_v16 }
 0x1fb   :  { %v2331_v6 = vpop.f32.mrf.mxu1 }
 0x1fd   :  { %v418_v8 = vpop.f32.mrf.mxu1 }
 0x1fe   :  { %v419_v25 = vadd.f32 %v418_v8, %v293_v16 }
 0x1ff   :  { %v2335_v10 = vpop.f32.mrf.mxu1 }
 0x201   :  { %v424_v13 = vpop.f32.mrf.mxu1 }
 0x202   :  { %v425_v28 = vadd.f32 %v424_v13, %v293_v16 }
 0x203   :  { %v2350_v18 = vpop.f32.mrf.mxu1 }
 0x205   :  { %v428_v26 = vpop.f32.mrf.mxu1 }
 0x206   :  { %v429_v29 = vadd.f32 %v428_v26, %v293_v16 }
 0x20e   :  { %v575_v15 = vpop.f32.mrf.mxu0 }
 0x20f   :  { %v576_v17 = vadd.f32 %v1636_v14, %v575_v15 }
 0x210   :  { %v1754_v20 = vpop.f32.mrf.mxu0 }
 0x211   :  { %1927 = vtanh.f32 %v576_v17 }
 0x212   :  { %v578_v21 = vpop.f32.mrf.mxu0  ;;  %1929 = vtanh.f32 %v415_v22  ;;  %v2378_v22 = vsub.s32 1, %v2333_v9 }
 0x213   :  { %1931 = vtanh.f32 %v419_v25 }
 0x214   :  { %v1755_v27 = vpop.f32.mrf.mxu0  ;;  %1933 = vtanh.f32 %v425_v28 }
 0x215   :  { %1935 = vtanh.f32 %v429_v29 }
 0x21e   :  { %v1928_v32 = vpop.eup %1927 }
 0x21f   :  { %v589_v33 = vrot.slane %v1928_v32, %v2353_v31  ;;  %v1930_v38 = vpop.eup %1929 }
 0x220   :  { %v1932_v40 = vpop.eup %1931 }
 0x221   :  { %v597_v34 = vrot.slane %v589_v33, %v2353_v31  ;;  %v590_v35 = vcombine.high %v589_v33, %v589_v33  ;;  %v1934_v43 = vpop.eup %1933 }
 0x222   :  { %v1936_v47 = vpop.eup %1935 }
 0x223   :  { %v608_v36 = vrot.slane %v597_v34, %v2338_v11  ;;  %v604_v37 = vrot.slane %v590_v35, %v2353_v31 }
 0x225   :  { %v615_v41 = vmul.f32 %v1930_v38, %v608_v36  ;;  %v612_v42 = vrot.slane %v604_v37, %v2338_v11  ;;  %v616_v46 = vmul.f32 %v1932_v40, %v608_v36 }
 0x227   :  { %v625_v44 = vmul.f32 %v1645_v39, %v615_v41  ;;  %v617_v45 = vmul.f32 %v1934_v43, %v612_v42  ;;  %v618_v50 = vmul.f32 %v1936_v47, %v612_v42  ;;  %v626_v51 = vmul.f32 %v1645_v39, %v616_v46 }
 0x229   :  { %629 = vadd.xlane.f32.xlu0 %v625_v44  ;;  %v627_v49 = vmul.f32 %v1645_v39, %v617_v45  ;;  %v628_v52 = vmul.f32 %v1645_v39, %v618_v50 }
 0x22b   :  { %633 = vadd.xlane.f32.xlu1 %v627_v49 }
 0x22d   :  { %631 = vadd.xlane.f32.xlu0 %v626_v51 }
 0x22f   :  { %635 = vadd.xlane.f32.xlu1 %v628_v52 }
 0x243   :  { %643 = vperm.xlu0 %1857, %v1646_v53  }
 0x2b2   :  { %v630_v54 = vpop.xlane.xlu0 %629 }
 0x2b4   :  { %v634_v57 = vpop.xlane.xlu1 %633 }
 0x2b6   :  { %v632_v59 = vpop.xlane.xlu0 %631 }
 0x2b8   :  { %v636_v0 = vpop.xlane.xlu1 %635 }
 0x2be   :  { %v644_v1 = vpop.permute.xlu0 %643 }
 0x2bf   :  { %v646_v2 = vadd.f32 %v644_v1, %v630_v54  ;;  %v647_v3 = vadd.f32 %v644_v1, %v632_v59  ;;  %v648_v4 = vadd.f32 %v644_v1, %v634_v57  ;;  %v649_v5 = vadd.f32 %v644_v1, %v636_v0 }
 0x2c1   :  { %v659_v8 = vrot.slane %v646_v2, %v2364_v60  ;;  %v664_v7 = vrot.slane %v647_v3, %v2367_v63  ;;  %v670_v13 = vrot.slane %v648_v4, %v2364_v60  ;;  %v674_v14 = vrot.slane %v649_v5, %v2367_v63 }
 0x2c3   :  { %v666_v15 = vsel %vm665_vm3, %v664_v7, %v659_v8  ;;  %v675_v16 = vsel %vm665_vm3, %v674_v14, %v670_v13  ;;  %v1895_v8 = vld [vmem:[#allocation12 + $0x38] sm:$0xff]   ;;  %v1896_v7 = vld [vmem:[#allocation12 + $0x30] sm:$0xff]   ;;  %v1897_v13 = vld [vmem:[#allocation12 + $0x28] sm:$0xff]  }
 0x2c4   :  { %v676_v17 = vsel %vm489_vm2, %v675_v16, %v666_v15  ;;  %1769 = vmatpush3.bf16.msra.mxu0 %v1895_v8  ;;  %v1898_v14 = vld [vmem:[#allocation12 + $0x20] sm:$0xff]  }
 0x2c5   :  { %v679_v20 = vsel %vm678_vm4, %v676_v17, -inf  ;;  %1770 = vmatprep.subr.bf16.mxu0 %v2154_v19 }
 0x2c6   :  { %680 = vmax.xlane.f32.xlu1 %v679_v20 }
 0x2c8   :  { %1771 = vmatpush3.bf16.msra.mxu0 %v1896_v7 }
 0x2c9   :  { %1772 = vmatprep.subr.bf16.mxu0 %v2154_v19 }
 0x2cc   :  { %1773 = vmatpush3.bf16.msra.mxu0 %v1897_v13  ;;  %v1658_v13 = vld [vmem:[%s2521_s12] ss:$0 sm:$0xff] }
 0x2cd   :  { %1774 = vmatprep.subr.bf16.mxu0 %v2154_v19 }
 0x2d0   :  { %1775 = vmatpush3.bf16.msra.mxu0 %v1898_v14  ;;  %v297_v14 = vrot.slane %v2343_v12, %v2378_v22 }
 0x2d1   :  { %1776 = vmatprep.subr.bf16.mxu0 %v2154_v19 }
 0x34f   :  { %v681_v21 = vpop.xlane.xlu1 %680 }
 0x350   :  { %v686_v23 = vrot.slane %v681_v21, %v2338_v11  ;;  %v690_v24 = vrot.slane %v681_v21, %v2378_v22 }
 0x352   :  { %v693_v25 = vsub.f32 %v646_v2, %v686_v23  ;;  %v694_v26 = vsub.f32 %v647_v3, %v686_v23  ;;  %v695_v28 = vsub.f32 %v648_v4, %v690_v24  ;;  %v696_v30 = vsub.f32 %v649_v5, %v690_v24 }
 0x354   :  { %v697_v27 = vmul.f32 1.442695, %v693_v25  ;;  %v699_v29 = vmul.f32 1.442695, %v694_v26  ;;  %v701_v32 = vmul.f32 1.442695, %v695_v28 }
 0x355   :  { %v703_v33 = vmul.f32 1.442695, %v696_v30  ;;  %v1899_v30 = vld [vmem:[#allocation12 + $0x18] sm:$0xff]  }
 0x356   :  { %1937 = vpow2.f32 %v697_v27  ;;  %1777 = vmatpush3.bf16.msra.mxu0 %v1899_v30 }
 0x357   :  { %1939 = vpow2.f32 %v699_v29  ;;  %1778 = vmatprep.subr.bf16.mxu0 %v2154_v19 }
 0x358   :  { %1941 = vpow2.f32 %v701_v32  ;;  %v1900_v32 = vld [vmem:[#allocation12 + $0x10] sm:$0xff]  }
 0x359   :  { %1943 = vpow2.f32 %v703_v33  ;;  %v1901_v33 = vld [vmem:[#allocation12 + $0x8] sm:$0xff]  }
 0x35a   :  { %1779 = vmatpush3.bf16.msra.mxu0 %v1900_v32 }
 0x35b   :  { %1780 = vmatprep.subr.bf16.mxu0 %v2154_v19 }
 0x35e   :  { %1781 = vmatpush3.bf16.msra.mxu0 %v1901_v33 }
 0x35f   :  { %1782 = vmatprep.subr.bf16.mxu0 %v2154_v19 }
 0x363   :  { %v1938_v34 = vpop.eup %1937 }
 0x364   :  { %710 = vperm.xlu1 %1858, %v1938_v34   ;;  %v1940_v35 = vpop.eup %1939 }
 0x365   :  { %v1942_v36 = vpop.eup %1941 }
 0x366   :  { %v1944_v37 = vpop.eup %1943 }
 0x368   :  { %713 = vperm.xlu1 %1858, %v1940_v35  }
 0x36c   :  { %716 = vperm.xlu1 %1858, %v1942_v36  }
 0x370   :  { %719 = vperm.xlu1 %1858, %v1944_v37  }
 0x3df   :  { %v711_v38 = vpop.permute.xlu1 %710 }
 0x3e0   :  { %v724_v43 = vrot.slane %v711_v38, %v2364_v60  ;;  %v1906_v38 = vld [vmem:[#allocation13 + $0x20] sm:$0xff]  }
 0x3e3   :  { %v714_v39 = vpop.permute.xlu1 %713 }
 0x3e4   :  { %v728_v41 = vrot.slane %v714_v39, %v2367_v63  ;;  %v430_v39 = vpop.f32.mrf.mxu1 }
 0x3e6   :  { %v729_v46 = vsel %vm665_vm3, %v728_v41, %v724_v43 }
 0x3e7   :  { %v717_v40 = vpop.permute.xlu1 %716 }
 0x3e8   :  { %v733_v44 = vrot.slane %v717_v40, %v2364_v60 }
 0x3eb   :  { %v720_v42 = vpop.permute.xlu1 %719 }
 0x3ec   :  { %v737_v45 = vrot.slane %v720_v42, %v2367_v63 }
 0x3ee   :  { %v738_v47 = vsel %vm665_vm3, %v737_v45, %v733_v44 }
 0x3ef   :  { %v739_v49 = vsel %vm489_vm2, %v738_v47, %v729_v46 }
 0x3f0   :  { %v741_v50 = vsel %vm678_vm4, %v739_v49, 0.0 }
 0x3f1   :  { %742 = vadd.xlane.f32.xlu1 %v741_v50 }
 0x47a   :  { %v743_v51 = vpop.xlane.xlu1 %742 }
 0x47b   :  { %1945 = vrcp.f32 %v743_v51 }
 0x488   :  { %v1946_v52 = vpop.eup %1945 }
 0x489   :  { %v749_v53 = vrot.slane %v1946_v52, %v2338_v11  ;;  %v753_v57 = vrot.slane %v1946_v52, %v2378_v22 }
 0x48b   :  { %v756_v54 = vmul.f32 %v1938_v34, %v749_v53  ;;  %v757_v56 = vmul.f32 %v1940_v35, %v749_v53  ;;  %v758_v0 = vmul.f32 %v1942_v36, %v753_v57  ;;  %v759_v1 = vmul.f32 %v1944_v37, %v753_v57  ;;  %v1902_v34 = vld [vmem:[#allocation12] sm:$0xff]   ;;  %v1903_v35 = vld [vmem:[#allocation13 + $0x38] sm:$0xff]   ;;  %v1904_v36 = vld [vmem:[#allocation13 + $0x30] sm:$0xff]  }
 0x48c   :  { %1783 = vmatpush3.bf16.msra.mxu0 %v1902_v34  ;;  %v1905_v37 = vld [vmem:[#allocation13 + $0x28] sm:$0xff]   ;;  %v1907_v57 = vld [vmem:[#allocation13 + $0x18] sm:$0xff]  }
 0x48d   :  { %v760_v58 = vpack.c.bf16 %v757_v56, %v756_v54  ;;  %v761_v3 = vpack.c.bf16 %v759_v1, %v758_v0  ;;  %1808 = vmatprep.subr.bf16.mxu0 %v2154_v19  ;;  %v1910_v0 = vld [vmem:[#allocation13] sm:$0xff]  }
 0x48f   :  { %v763_v59 = vunpack.c.l.b16 %v760_v58  ;;  %v764_v2 = vunpack.c.h.b16 %v760_v58  ;;  %v826_v4 = vunpack.c.l.b16 %v761_v3  ;;  %v827_v5 = vunpack.c.h.b16 %v761_v3  ;;  %v1908_v58 = vld [vmem:[#allocation13 + $0x10] sm:$0xff]  }
 0x491   :  { %766 = vperm.xlu0 %1857, %v763_v59   ;;  %v1909_v59 = vld [vmem:[#allocation13 + $0x8] sm:$0xff]  }
 0x495   :  { %769 = vperm.xlu0 %1857, %v764_v2  }
 0x499   :  { %829 = vperm.xlu0 %1857, %v826_v4  }
 0x49d   :  { %832 = vperm.xlu0 %1857, %v827_v5  }
 0x50c   :  { %v767_v15 = vpop.permute.xlu0 %766 }
 0x50d   :  { %v774_v17 = vrot.slane %v767_v15, %v2364_v60 }
 0x510   :  { %v770_v16 = vpop.permute.xlu0 %769 }
 0x511   :  { %v778_v20 = vrot.slane %v770_v16, %v2367_v63 }
 0x513   :  { %v779_v21 = vsel %vm665_vm3, %v778_v20, %v774_v17  ;;  %v417_v20 = vadd.f32 %v2331_v6, %v297_v14 }
 0x514   :  { %v780_v23 = vpack.c.b16 %v779_v21, %v779_v21  ;;  %v830_v24 = vpop.permute.xlu0 %829 }
 0x515   :  { %v837_v26 = vrot.slane %v830_v24, %v2364_v60  ;;  %v427_v24 = vadd.f32 %v2350_v18, %v297_v14  ;;  %v1667_v18 = vld [vmem:[%s2522_s13] ss:$0 sm:$0xff] }
 0x516   :  { %1759 = vmatmul.mubr.msk.bf16.vlgmr.msra.gmra.mxu1 %vm781_vm5, %v780_v23  ;;  %v421_v23 = vadd.f32 %v2335_v10, %v297_v14 }
 0x517   :  { %1763 = vmatpush3.bf16.msra.mxu1 %v2315_v55  ;;  %1764 = vmatprep.mubr.msk.bf16.mxu1 %vm2156_vm1, %v2154_v19 }
 0x518   :  { %v833_v25 = vpop.permute.xlu0 %832  ;;  %1788 = vmatprep.subr.bf16.mxu1 %v2154_v19 }
 0x519   :  { %v841_v27 = vrot.slane %v833_v25, %v2367_v63  ;;  %v431_v25 = vadd.f32 %v430_v39, %v297_v14 }
 0x51b   :  { %v842_v28 = vsel %vm665_vm3, %v841_v27, %v837_v26 }
 0x51c   :  { %v843_v29 = vpack.c.b16 %v842_v28, %v842_v28 }
 0x51e   :  { %1765 = vmatmul.mubr.msk.bf16.vlgmr.msra.gmra.mxu1 %vm781_vm5, %v843_v29 }
 0x51f   :  { %1804 = vmatprep.mubr.msk.bf16.mxu1 %vm2156_vm1, %v2154_v19  ;;  %1789 = vmatpush3.bf16.msra.mxu1 %v1903_v35 }
 0x520   :  { %1790 = vmatprep.subr.bf16.mxu1 %v2154_v19 }
 0x523   :  { %1791 = vmatpush3.bf16.msra.mxu1 %v1904_v36 }
 0x524   :  { %1792 = vmatprep.subr.bf16.mxu1 %v2154_v19 }
 0x527   :  { %1793 = vmatpush3.bf16.msra.mxu1 %v1905_v37 }
 0x528   :  { %1794 = vmatprep.subr.bf16.mxu1 %v2154_v19 }
 0x52b   :  { %1795 = vmatpush3.bf16.msra.mxu1 %v1906_v38 }
 0x52c   :  { %1796 = vmatprep.subr.bf16.mxu1 %v2154_v19 }
 0x52f   :  { %1797 = vmatpush3.bf16.msra.mxu1 %v1907_v57 }
 0x530   :  { %1798 = vmatprep.subr.bf16.mxu1 %v2154_v19 }
 0x533   :  { %1799 = vmatpush3.bf16.msra.mxu1 %v1908_v58 }
 0x534   :  { %1800 = vmatprep.subr.bf16.mxu1 %v2154_v19 }
 0x537   :  { %1801 = vmatpush3.bf16.msra.mxu1 %v1909_v59 }
 0x538   :  { %1802 = vmatprep.subr.bf16.mxu1 %v2154_v19 }
 0x53b   :  { %1803 = vmatpush3.bf16.msra.mxu1 %v1910_v0 }
 0x53c   :  { %1814 = vmatprep.subr.bf16.mxu1 %v2154_v19 }
 0x5d6   :  { %v819_v40 = vpop.f32.mrf.mxu1 }
 0x5d7   :  { %v887_v45 = vpack.c.bf16 %v819_v40, %v819_v40 }
 0x5d8   :  { %v1760_v41 = vpop.f32.mrf.mxu1 }
 0x5d9   :  { %v897_v51 = vunpack.c.l.b16 %v887_v45 }
 0x5da   :  { %v822_v42 = vpop.f32.mrf.mxu1 }
 0x5db   :  { %v1668_v42 = vld [vmem:[#allocation3] ss:$0 sm:$0xff] }
 0x5dc   :  { %v1761_v43 = vpop.f32.mrf.mxu1 }
 0x5de   :  { %v881_v44 = vpop.f32.mrf.mxu1 }
 0x5df   :  { %v888_v46 = vpack.c.bf16 %v881_v44, %v881_v44 }
 0x5e0   :  { %v1766_v47 = vpop.f32.mrf.mxu1 }
 0x5e1   :  { %v898_v49 = vunpack.c.l.b16 %v888_v46 }
 0x5e2   :  { %v884_v50 = vpop.f32.mrf.mxu1 }
 0x5e3   :  { %v899_v52 = vrot.slane %v898_v49, 7 }
 0x5e4   :  { %v1767_v53 = vpop.f32.mrf.mxu1 }
 0x5e5   :  { %v900_v54 = vsel %vm489_vm2, %v899_v52, %v897_v51 }
 0x5e6   :  { %v901_v56 = vpack.c.b16 %v900_v54, %v900_v54 }
 0x5e8   :  { %1785 = vmatmul.mubr.bf16.vlgmr.msra.gmra.mxu0 %v901_v56 }
 0x5e9   :  { %1809 = vmatpush3.bf16.msra.mxu0 %v2310_v48  ;;  %1810 = vmatprep.mubr.msk.bf16.mxu0 %vm2156_vm1, %v2154_v19  ;;  %v1649_v48 = vld [vmem:[%s2519_s10] ss:$0 sm:$0xff] }
 0x5ea   :  { %1820 = vmatprep.subr.bf16.mxu0 %v2154_v19 }
 0x6a8   :  { %v985_v1 = vpop.f32.mrf.mxu0 }
 0x6a9   :  { %v986_v2 = vadd.f32 %v1649_v48, %v985_v1 }
 0x6aa   :  { %v1786_v3 = vpop.f32.mrf.mxu0 }
 0x6ab   :  { %1947 = vtanh.f32 %v986_v2 }
 0x6ac   :  { %v988_v4 = vpop.f32.mrf.mxu0 }
 0x6ae   :  { %v1787_v5 = vpop.f32.mrf.mxu0 }
 0x6b8   :  { %v2430_v8 = vpop.eup %1947 }
 0x6b9   :  { %v1028_v7 = vpack.c.bf16 %v2430_v8, %v2430_v8 }
 0x6bb   :  { %1805 = vmatmul.mubr.bf16.vlgmr.msra.gmra.mxu1 %v1028_v7 }
 0x6bc   :  { %1815 = vmatpush3.bf16.msra.mxu1 %v2315_v55  ;;  %1816 = vmatprep.mubr.msk.bf16.mxu1 %vm2156_vm1, %v2154_v19 }
 0x77b   :  { %v1117_v15 = vpop.f32.mrf.mxu1 }
 0x77c   :  { %v1118_v16 = vadd.f32 %v1658_v13, %v1117_v15 }
 0x77d   :  { %v1806_v17 = vpop.f32.mrf.mxu1 }
 0x77e   :  { %1949 = vtanh.f32 %v1118_v16 }
 0x77f   :  { %v1120_v21 = vpop.f32.mrf.mxu1  ;;  %1951 = vtanh.f32 %v417_v20 }
 0x780   :  { %1953 = vtanh.f32 %v421_v23 }
 0x781   :  { %v1807_v55 = vpop.f32.mrf.mxu1  ;;  %1955 = vtanh.f32 %v427_v24 }
 0x782   :  { %1957 = vtanh.f32 %v431_v25 }
 0x78b   :  { %v1950_v26 = vpop.eup %1949 }
 0x78c   :  { %v1131_v12 = vrot.slane %v1950_v26, %v2353_v31  ;;  %v1952_v29 = vpop.eup %1951 }
 0x78d   :  { %v1954_v10 = vpop.eup %1953 }
 0x78e   :  { %v1139_v27 = vrot.slane %v1131_v12, %v2353_v31  ;;  %v1132_v28 = vcombine.high %v1131_v12, %v1131_v12  ;;  %v1956_v35 = vpop.eup %1955 }
 0x78f   :  { %v1958_v39 = vpop.eup %1957 }
 0x790   :  { %v1150_v6 = vrot.slane %v1139_v27, %v2338_v11  ;;  %v1146_v30 = vrot.slane %v1132_v28, %v2353_v31 }
 0x792   :  { %v1158_v32 = vmul.f32 %v1954_v10, %v1150_v6  ;;  %v1157_v33 = vmul.f32 %v1952_v29, %v1150_v6  ;;  %v1154_v34 = vrot.slane %v1146_v30, %v2338_v11 }
 0x794   :  { %v1168_v36 = vmul.f32 %v1667_v18, %v1158_v32  ;;  %v1167_v37 = vmul.f32 %v1667_v18, %v1157_v33  ;;  %v1159_v38 = vmul.f32 %v1956_v35, %v1154_v34  ;;  %v1160_v41 = vmul.f32 %v1958_v39, %v1154_v34 }
 0x796   :  { %1173 = vadd.xlane.f32.xlu1 %v1168_v36  ;;  %1171 = vadd.xlane.f32.xlu0 %v1167_v37  ;;  %v1169_v40 = vmul.f32 %v1667_v18, %v1159_v38  ;;  %v1170_v31 = vmul.f32 %v1667_v18, %v1160_v41 }
 0x79a   :  { %1175 = vadd.xlane.f32.xlu1 %v1169_v40 }
 0x79e   :  { %1177 = vadd.xlane.f32.xlu1 %v1170_v31 }
 0x7af   :  { %1185 = vperm.xlu1 %1858, %v1668_v42  }
 0x81f   :  { %v1174_v43 = vpop.xlane.xlu1 %1173  ;;  %v1172_v46 = vpop.xlane.xlu0 %1171 }
 0x823   :  { %v1176_v44 = vpop.xlane.xlu1 %1175 }
 0x827   :  { %v1178_v45 = vpop.xlane.xlu1 %1177 }
 0x82b   :  { %v1186_v47 = vpop.permute.xlu1 %1185 }
 0x82c   :  { %v1188_v49 = vadd.f32 %v1186_v47, %v1172_v46  ;;  %v1189_v50 = vadd.f32 %v1186_v47, %v1174_v43  ;;  %v1190_v51 = vadd.f32 %v1186_v47, %v1176_v44  ;;  %v1191_v52 = vadd.f32 %v1186_v47, %v1178_v45 }
 0x82e   :  { %v1199_v53 = vrot.slane %v1188_v49, %v2364_v60  ;;  %v1203_v54 = vrot.slane %v1189_v50, %v2367_v63  ;;  %v1208_v56 = vrot.slane %v1190_v51, %v2364_v60  ;;  %v1212_v57 = vrot.slane %v1191_v52, %v2367_v63 }
 0x830   :  { %v1204_v58 = vsel %vm665_vm3, %v1203_v54, %v1199_v53  ;;  %v1213_v59 = vsel %vm665_vm3, %v1212_v57, %v1208_v56  ;;  %v1911_v57 = vld [vmem:[#allocation15 + $0x38] sm:$0xff]  }
 0x831   :  { %v1214_v0 = vsel %vm489_vm2, %v1213_v59, %v1204_v58  ;;  %v1912_v59 = vld [vmem:[#allocation15 + $0x30] sm:$0xff]  }
 0x832   :  { %v1216_v48 = vsel %vm678_vm4, %v1214_v0, -inf  ;;  %v1913_v0 = vld [vmem:[#allocation15 + $0x28] sm:$0xff]  }
 0x833   :  { %1217 = vmax.xlane.f32.xlu0 %v1216_v48  ;;  %v1916_v48 = vld [vmem:[#allocation15 + $0x10] sm:$0xff]  }
 0x8bc   :  { %v1218_v1 = vpop.xlane.xlu0 %1217 }
 0x8bd   :  { %v1223_v2 = vrot.slane %v1218_v1, %v2338_v11  ;;  %v1227_v3 = vrot.slane %v1218_v1, %v2378_v22  ;;  %v1917_v1 = vld [vmem:[#allocation15 + $0x8] sm:$0xff]  }
 0x8bf   :  { %v1230_v4 = vsub.f32 %v1188_v49, %v1223_v2  ;;  %v1231_v5 = vsub.f32 %v1189_v50, %v1223_v2  ;;  %v1232_v7 = vsub.f32 %v1190_v51, %v1227_v3  ;;  %v1233_v15 = vsub.f32 %v1191_v52, %v1227_v3  ;;  %v1918_v2 = vld [vmem:[#allocation15] sm:$0xff]  }
 0x8c1   :  { %v1234_v13 = vmul.f32 1.442695, %v1230_v4  ;;  %v1236_v14 = vmul.f32 1.442695, %v1231_v5  ;;  %v1238_v16 = vmul.f32 1.442695, %v1232_v7 }
 0x8c2   :  { %v1240_v17 = vmul.f32 1.442695, %v1233_v15 }
 0x8c3   :  { %1959 = vpow2.f32 %v1234_v13 }
 0x8c4   :  { %1961 = vpow2.f32 %v1236_v14 }
 0x8c5   :  { %1963 = vpow2.f32 %v1238_v16 }
 0x8c6   :  { %1965 = vpow2.f32 %v1240_v17 }
 0x8d0   :  { %v1960_v20 = vpop.eup %1959 }
 0x8d1   :  { %v1962_v21 = vpop.eup %1961  ;;  %1247 = vperm.xlu0 %1857, %v1960_v20  }
 0x8d2   :  { %1250 = vperm.xlu1 %1858, %v1962_v21   ;;  %v1964_v23 = vpop.eup %1963 }
 0x8d3   :  { %v1966_v55 = vpop.eup %1965 }
 0x8d6   :  { %1253 = vperm.xlu1 %1858, %v1964_v23  }
 0x8da   :  { %1256 = vperm.xlu1 %1858, %v1966_v55  }
 0x94c   :  { %v1248_v25 = vpop.permute.xlu0 %1247 }
 0x94d   :  { %v1251_v24 = vpop.permute.xlu1 %1250  ;;  %v1261_v27 = vrot.slane %v1248_v25, %v2364_v60 }
 0x94e   :  { %v1265_v12 = vrot.slane %v1251_v24, %v2367_v63 }
 0x950   :  { %v1266_v30 = vsel %vm665_vm3, %v1265_v12, %v1261_v27 }
 0x951   :  { %v1254_v26 = vpop.permute.xlu1 %1253 }
 0x952   :  { %v1270_v29 = vrot.slane %v1254_v26, %v2364_v60 }
 0x955   :  { %v1257_v28 = vpop.permute.xlu1 %1256 }
 0x956   :  { %v1274_v6 = vrot.slane %v1257_v28, %v2367_v63 }
 0x958   :  { %v1275_v10 = vsel %vm665_vm3, %v1274_v6, %v1270_v29  ;;  %v1530_v6 = vmul.f32 %v2430_v8, %v2430_v8 }
 0x959   :  { %v1276_v18 = vsel %vm489_vm2, %v1275_v10, %v1266_v30 }
 0x95a   :  { %v1278_v32 = vsel %vm678_vm4, %v1276_v18, 0.0  ;;  %v1532_v30 = vrot.slane %v1530_v6, 1  ;;  %v1529_v18 = vmul.f32 %v2320_v61, %v2320_v61 }
 0x95b   :  { %1279 = vadd.xlane.f32.xlu1 %v1278_v32 }
 0x9e4   :  { %v1280_v33 = vpop.xlane.xlu1 %1279 }
 0x9e5   :  { %1967 = vrcp.f32 %v1280_v33  ;;  %v1528_v33 = vmul.f32 %v2322_v62, %v2322_v62 }
 0x9f2   :  { %v1968_v34 = vpop.eup %1967 }
 0x9f3   :  { %v1290_v35 = vrot.slane %v1968_v34, %v2378_v22  ;;  %v1286_v38 = vrot.slane %v1968_v34, %v2338_v11  ;;  %v1536_v34 = vadd.f32 %v1532_v30, %v1529_v18 }
 0x9f5   :  { %v1295_v36 = vmul.f32 %v1964_v23, %v1290_v35  ;;  %v1296_v37 = vmul.f32 %v1966_v55, %v1290_v35  ;;  %v1293_v41 = vmul.f32 %v1960_v20, %v1286_v38  ;;  %v1294_v31 = vmul.f32 %v1962_v21, %v1286_v38 }
 0x9f7   :  { %v1298_v39 = vpack.c.bf16 %v1296_v37, %v1295_v36  ;;  %v1297_v43 = vpack.c.bf16 %v1294_v31, %v1293_v41  ;;  %v1535_v36 = vadd.f32 %v1530_v6, %v1528_v33 }
 0x9f9   :  { %v1362_v40 = vunpack.c.l.b16 %v1298_v39  ;;  %v1363_v42 = vunpack.c.h.b16 %v1298_v39  ;;  %v1300_v44 = vunpack.c.l.b16 %v1297_v43  ;;  %v1301_v45 = vunpack.c.h.b16 %v1297_v43 }
 0x9fa   :  { %v2158_v43 = vmov 1983009808  }
 0x9fb   :  { %1365 = vperm.xlu0 %1857, %v1362_v40  }
 0x9ff   :  { %1368 = vperm.xlu0 %1857, %v1363_v42  }
 0xa03   :  { %1303 = vperm.xlu0 %1857, %v1300_v44   ;;  %v1566_v44 = vunpack.c.l.s4 %v2158_v43 }
 0xa07   :  { %1306 = vperm.xlu0 %1857, %v1301_v45   ;;  %v1567_v45 = vunpack.c.0.s8 %v1566_v44 }
 0xa76   :  { %v1366_v46 = vpop.permute.xlu0 %1365 }
 0xa77   :  { %v1373_v22 = vrot.slane %v1366_v46, %v2364_v60 }
 0xa7a   :  { %v1369_v47 = vpop.permute.xlu0 %1368 }
 0xa7b   :  { %v1377_v49 = vrot.slane %v1369_v47, %v2367_v63 }
 0xa7d   :  { %v1378_v11 = vsel %vm665_vm3, %v1377_v49, %v1373_v22 }
 0xa7e   :  { %v1379_v50 = vpack.c.b16 %v1378_v11, %v1378_v11  ;;  %v1304_v51 = vpop.permute.xlu0 %1303 }
 0xa7f   :  { %v1311_v53 = vrot.slane %v1304_v51, %v2364_v60  ;;  %v1914_v60 = vld [vmem:[#allocation15 + $0x20] sm:$0xff]   ;;  %v1570_v51 = vsub.s32 %v1567_v45, %v2333_v9 }
 0xa80   :  { %1817 = vmatmul.mubr.msk.bf16.vlgmr.msra.gmra.mxu1 %vm781_vm5, %v1379_v50 }
 0xa82   :  { %v1307_v52 = vpop.permute.xlu0 %1306 }
 0xa83   :  { %v1315_v54 = vrot.slane %v1307_v52, %v2367_v63  ;;  %v1915_v63 = vld [vmem:[#allocation15 + $0x18] sm:$0xff]  }
 0xa85   :  { %v1316_v56 = vsel %vm665_vm3, %v1315_v54, %v1311_v53 }
 0xa86   :  { %v1317_v58 = vpack.c.b16 %v1316_v56, %v1316_v56 }
 0xa88   :  { %1811 = vmatmul.mubr.msk.bf16.vlgmr.msra.gmra.mxu0 %vm781_vm5, %v1317_v58 }
 0xa89   :  { %1821 = vmatpush3.bf16.msra.mxu0 %v1911_v57  ;;  %1836 = vmatprep.mubr.msk.bf16.mxu0 %vm2156_vm1, %v2154_v19 }
 0xa8a   :  { %1822 = vmatprep.subr.bf16.mxu0 %v2154_v19 }
 0xa8d   :  { %1823 = vmatpush3.bf16.msra.mxu0 %v1912_v59 }
 0xa8e   :  { %1824 = vmatprep.subr.bf16.mxu0 %v2154_v19 }
 0xa91   :  { %1825 = vmatpush3.bf16.msra.mxu0 %v1913_v0 }
 0xa92   :  { %1826 = vmatprep.subr.bf16.mxu0 %v2154_v19 }
 0xa95   :  { %1827 = vmatpush3.bf16.msra.mxu0 %v1914_v60 }
 0xa96   :  { %1828 = vmatprep.subr.bf16.mxu0 %v2154_v19 }
 0xa99   :  { %1829 = vmatpush3.bf16.msra.mxu0 %v1915_v63 }
 0xa9a   :  { %1830 = vmatprep.subr.bf16.mxu0 %v2154_v19 }
 0xa9d   :  { %1831 = vmatpush3.bf16.msra.mxu0 %v1916_v48 }
 0xa9e   :  { %1832 = vmatprep.subr.bf16.mxu0 %v2154_v19 }
 0xaa1   :  { %1833 = vmatpush3.bf16.msra.mxu0 %v1917_v1 }
 0xaa2   :  { %1834 = vmatprep.subr.bf16.mxu0 %v2154_v19  ;;  %v1671_v19 = vld [vmem:[%s2524_s16] ss:$0 sm:$0xff]  ;;  %s2159_s16 = smov [#allocation16]  }
 0xaa3   :  { %s1601_s22 = sshll.u32 %s2159_s16, 4  ;;  %s1602_s22 = int_to_ptr.vmem [resolvable:$true] %s1601_s22 }
 0xaa4   :  { %s2113_s23 = scalar_lea.vmem %s1602_s22, 96  ;;  %p2118_p8 = scmp.lt.s32.totalorder %s1602_s22, %s1602_s22 }
 0xaa5   :  { %1835 = vmatpush3.bf16.msra.mxu0 %v1918_v2  ;;  %p2114_p7 = scmp.ne.s32.totalorder %s1602_s22, %s2113_s23  ;;  %p2119_p9 = scmp.lt.s32.totalorder %s2113_s23, %s2113_s23 }
 0xaa7   :  { %p2120_p10 = por %p2119_p9, %p2118_p8 }
 0xaa9   :  { %p2121_p11 = pnand %p2120_p10, %p2114_p7 }
 0xb40   :  { %v1417_v3 = vpop.f32.mrf.mxu1 }
 0xb41   :  { %v1424_v5 = vpack.c.bf16 %v1417_v3, %v1417_v3 }
 0xb42   :  { %v1818_v4 = vpop.f32.mrf.mxu1 }
 0xb43   :  { %v1434_v14 = vunpack.c.l.b16 %v1424_v5 }
 0xb44   :  { %v1420_v7 = vpop.f32.mrf.mxu1 }
 0xb45   :  { %v1435_v20 = vrot.slane %v1434_v14, 7 }
 0xb46   :  { %v1819_v13 = vpop.f32.mrf.mxu1 }
 0xb48   :  { %v1355_v15 = vpop.f32.mrf.mxu0 }
 0xb49   :  { %v1423_v16 = vpack.c.bf16 %v1355_v15, %v1355_v15 }
 0xb4a   :  { %v1812_v17 = vpop.f32.mrf.mxu0 }
 0xb4b   :  { %v1433_v21 = vunpack.c.l.b16 %v1423_v16 }
 0xb4c   :  { %v1358_v23 = vpop.f32.mrf.mxu0 }
 0xb4d   :  { %v1436_v55 = vsel %vm489_vm2, %v1435_v20, %v1433_v21 }
 0xb4e   :  { %v1437_v24 = vpack.c.b16 %v1436_v55, %v1436_v55  ;;  %v1813_v25 = vpop.f32.mrf.mxu0 }
 0xb50   :  { %1837 = vmatmul.mubr.bf16.vlgmr.msra.gmra.mxu0 %v1437_v24 }
 0xc10   :  { %v1521_v26 = vpop.f32.mrf.mxu0 }
 0xc11   :  { %v1522_v12 = vadd.f32 %v1671_v19, %v1521_v26 }
 0xc12   :  { %v1838_v27 = vpop.f32.mrf.mxu0 }
 0xc13   :  { %1969 = vtanh.f32 %v1522_v12 }
 0xc14   :  { %v1524_v28 = vpop.f32.mrf.mxu0 }
 0xc16   :  { %v1839_v29 = vpop.f32.mrf.mxu0 }
 0xc20   :  { %v1970_v10 = vpop.eup %1969 }
 0xc21   :  { %v1537_v32 = vmul.f32 %v1970_v10, %v1970_v10 }
 0xc23   :  { %v1539_v35 = vrot.slane %v1537_v32, 1  ;;  %v1542_v38 = vadd.f32 %v1537_v32, %v1535_v36 }
 0xc25   :  { %v1543_v37 = vadd.f32 %v1539_v35, %v1536_v34 }
 0xc27   :  { %v1546_v39 = vrot.slane %v1543_v37, 7 }
 0xc29   :  { %v1547_v40 = vsel %vm489_vm2, %v1546_v39, %v1542_v38 }
 0xc2a   :  { %v1550_v41 = vsel %vm1549_vm6, %v1547_v40, 0.0 }
 0xc2b   :  { %1551 = vadd.xlane.f32.xlu0 %v1550_v41 }
 0xcb4   :  { %v1552_v31 = vpop.xlane.xlu0 %1551 }
 0xcb5   :  { %v1553_v42 = vadd.f32 1e-12, %v1552_v31 }
 0xcb7   :  { %1971 = vrsqrt.f32 %v1553_v42 }
 0xcc4   :  { %v1972_v46 = vpop.eup %1971 }
 0xcc5   :  { %v1556_v47 = vrot.slane %v1972_v46, 1  ;;  %v1561_v22 = vmul.f32 %v1972_v46, %v2430_v8  ;;  %v1562_v49 = vmul.f32 %v1972_v46, %v1970_v10  ;;  %v1559_v11 = vmul.f32 %v1972_v46, %v2322_v62 }
 0xcc7   :  { %v1560_v50 = vmul.f32 %v1556_v47, %v2320_v61  ;;  %1593 = vst [vmem:[#allocation16 + $0x2] sm:$0x3] %v1561_v22  ;;  %1594 = vst [vmem:[#allocation16 + $0x4] sm:$0x3] %v1562_v49  ;;  %v1571_v53 = vrot.slane %v1559_v11, %v1570_v51 }
 0xcc9   :  { %v1578_v52 = vrot.slane %v1560_v50, %v1570_v51 }
 0xccb   :  { %v1583_v54 = vrot.slane %v1578_v52, 7 }
 0xccd   :  { %v1584_v56 = vsel %vm489_vm2, %v1583_v54, %v1571_v53 }
 0xcce   :  { %v1586_v8 = vsel %vm1585_vm7, %v1583_v54, %v1584_v56 }
 0xccf   :  { %v1588_v57 = vsel %vm1587_vm8, %v1583_v54, %v1586_v8 }
 0xcd0   :  { %v1590_v62 = vsel %vm1589_vm9, %v1583_v54, %v1588_v57 }
 0xcd1   :  { %1592 = vst [vmem:[#allocation16] sm:$0x3] %v1590_v62 }
 0xcd2   :  { %2124 = shalt.err (!%p2121_p11)
}
 0xcd3   :  { %1604 = dma.vmem_to_hbm [thread:$0]  %s1602_s22, 96, %s2525_s17, [#allocation6]  }
 0xcd4   :  { %2141 = dma.done.wait [#allocation6], 96  }
 0xcd5   :  { %2142 = vsyncadd [#allocation6], 4294967200 }
 0xcd6   :  { %1608 = vsyncpa [#allocation5], 1 }
 0xcd7   :  { %1609 = vsyncpa [#allocation8], 1 }
 0xcd8   :  { %1610 = vsyncpa [#allocation11], 1 }
 0xcd9   :  { %1611 = vsyncpa [#allocation14], 1 }
 0xcda   :  { %1612 = vsyncpa [#allocation6], 1 }

</bundles_post_ra>
